<compile_context>
chip_gen: v6e
topology: v6e:2x2x1
jax: 0.10.0
libtpu: 0.0.40
codegen_flags: <defaults>
</compile_context>

<pallas_src>
import functools

import jax
import jax.numpy as jnp
from jax import lax
from jax.experimental import pallas as pl
from jax.experimental.pallas import tpu as pltpu


def _round_up(x, m):
    return ((x + m - 1) // m) * m


def _vmem_limit_bytes():
    """~Half of physical VMEM: 64 MiB on v5e/v6e (128 MiB), 32 MiB on v7x (64 MiB/TC)."""
    cap = 64 * 1024 * 1024
    try:
        cap = int(pltpu.get_tpu_info().vmem_capacity_bytes)
    except Exception:
        pass
    return max(32 * 1024 * 1024, min(96 * 1024 * 1024, cap // 2))


_VMEM_LIMIT = _vmem_limit_bytes()


def _pick_tile(padded, unit, max_tile, min_blocks=1):
    """Largest tile (multiple of `unit`, <= max_tile) that divides `padded`.

    Prefers a tile leaving >= min_blocks grid blocks so both v7x TensorCores
    can be fed along a 'parallel' axis; falls back to a single block.
    """
    q = padded // unit
    dmax = max(1, max_tile // unit)
    divs = [d for d in range(1, min(q, dmax) + 1) if q % d == 0]
    good = [d for d in divs if q // d >= min_blocks]
    return (max(good) if good else max(divs)) * unit


# ---------------------------------------------------------------------------
# Kernel 1: tiled GEMM (bf16 operands, f32 accumulation directly in the
# resident output block) with BatchNorm batch statistics fused in the epilogue.
# ---------------------------------------------------------------------------
def _matmul_stats_kernel(a_ref, b_ref, o_ref, sum_ref, sq_ref):
    k = pl.program_id(2)

    @pl.when(k == 0)
    def _init():
        o_ref[...] = jnp.zeros_like(o_ref)

    o_ref[...] += jnp.dot(a_ref[...], b_ref[...],
                          preferred_element_type=jnp.float32)

    @pl.when(k == pl.num_programs(2) - 1)
    def _epilogue():
        acc = o_ref[...]
        # Per-column partial sums for this M-block; tiny cross-block reduce in XLA.
        sum_ref[...] = jnp.sum(acc, axis=0, keepdims=True)[None]
        sq_ref[...] = jnp.sum(acc * acc, axis=0, keepdims=True)[None]


def pallas_matmul_stats(a, b):
    """(M, K) @ (K, N) with bf16 MXU operands and f32 accumulation.

    Returns (out f32 (M, N), per-column sum (N,), per-column sum-of-squares (N,)).
    Zero-padded rows/columns contribute nothing to the sums.
    """
    M, K = a.shape
    K2, N = b.shape
    assert K == K2
    a = a.astype(jnp.bfloat16)
    b = b.astype(jnp.bfloat16)

    # Minimal padding only (M -> x8, K/N -> x128); tiles are divisors of these.
    Mp, Kp, Np = _round_up(M, 8), _round_up(K, 128), _round_up(N, 128)
    if (Mp, Kp) != (M, K):
        a = jnp.pad(a, ((0, Mp - M), (0, Kp - K)))
    if (Kp, Np) != (K, N):
        b = jnp.pad(b, ((0, Kp - K), (0, Np - N)))

    tm = _pick_tile(Mp, 8, 512, min_blocks=2)   # >=2 M blocks when possible (v7x)
    tk = _pick_tile(Kp, 128, 512)
    tn = _pick_tile(Np, 128, 512)               # full N when N <= 512 -> j grid = 1
    gm, gn, gk = Mp // tm, Np // tn, Kp // tk

    out, colsum, colsq = pl.pallas_call(
        _matmul_stats_kernel,
        out_shape=(jax.ShapeDtypeStruct((Mp, Np), jnp.float32),
                   jax.ShapeDtypeStruct((gm, 1, Np), jnp.float32),
                   jax.ShapeDtypeStruct((gm, 1, Np), jnp.float32)),
        grid_spec=pltpu.PrefetchScalarGridSpec(
            num_scalar_prefetch=0,
            grid=(gm, gn, gk),
            in_specs=[pl.BlockSpec((tm, tk), lambda i, j, k: (i, k)),
                      pl.BlockSpec((tk, tn), lambda i, j, k: (k, j))],
            out_specs=(pl.BlockSpec((tm, tn), lambda i, j, k: (i, j)),
                       pl.BlockSpec((1, 1, tn), lambda i, j, k: (i, 0, j)),
                       pl.BlockSpec((1, 1, tn), lambda i, j, k: (i, 0, j)))),
        compiler_params=pltpu.CompilerParams(
            dimension_semantics=("parallel", "parallel", "arbitrary"),
            vmem_limit_bytes=_VMEM_LIMIT),
    )(a, b)

    s = jnp.sum(colsum[:, 0, :N], axis=0)
    sq = jnp.sum(colsq[:, 0, :N], axis=0)
    return out[:M, :N], s, sq


# ---------------------------------------------------------------------------
# Kernel 2: fused per-channel affine (BatchNorm apply) + PReLU.
# alpha is a traced (1, 1) operand (learned PReLU parameter).
# ---------------------------------------------------------------------------
def _affine_prelu_kernel(x_ref, scale_ref, shift_ref, alpha_ref, o_ref):
    y = x_ref[...] * scale_ref[...] + shift_ref[...]
    o_ref[...] = jnp.where(y >= 0.0, y, y * alpha_ref[...]).astype(o_ref.dtype)


def pallas_affine_prelu(x, scale, shift, alpha, *, out_dtype=jnp.float32,
                        tr_max=1024):
    M, C = x.shape
    x = x.astype(jnp.float32)
    scale = jnp.reshape(scale, (1, C)).astype(jnp.float32)
    shift = jnp.reshape(shift, (1, C)).astype(jnp.float32)
    alpha = jnp.reshape(alpha, (1, 1)).astype(jnp.float32)

    Mp = _round_up(M, 8)
    if Mp != M:
        x = jnp.pad(x, ((0, Mp - M), (0, 0)))

    # Bound the per-block working set (in + out, double-buffered) to ~8 MiB so
    # the plan also fits v7x's 64 MiB/TC VMEM for large channel counts.
    bytes_per_row = C * (4 + jnp.dtype(out_dtype).itemsize) * 2
    row_cap = max(8, (8 * 1024 * 1024) // max(1, bytes_per_row))
    tr = _pick_tile(Mp, 8, min(tr_max, _round_up(row_cap, 8)), min_blocks=2)

    out = pl.pallas_call(
        _affine_prelu_kernel,
        out_shape=jax.ShapeDtypeStruct((Mp, C), out_dtype),
        grid_spec=pltpu.PrefetchScalarGridSpec(
            num_scalar_prefetch=0,
            grid=(Mp // tr,),
            in_specs=[pl.BlockSpec((tr, C), lambda i: (i, 0)),
                      pl.BlockSpec((1, C), lambda i: (0, 0)),
                      pl.BlockSpec((1, C), lambda i: (0, 0)),
                      pl.BlockSpec((1, 1), lambda i: (0, 0))],
            out_specs=pl.BlockSpec((tr, C), lambda i: (i, 0))),
        compiler_params=pltpu.CompilerParams(
            dimension_semantics=("parallel",),
            vmem_limit_bytes=_VMEM_LIMIT),
    )(x, scale, shift, alpha)
    return out[:M]


# ---------------------------------------------------------------------------
# Wrapper helpers (pure data movement, left to XLA).
# ---------------------------------------------------------------------------
def _im2col_3x3(xp):
    """xp: (N, H+2, W+2, C) -> (N, H, W, 9*C), patch order (kh, kw, c)."""
    N, Hp, Wp, C = xp.shape
    H, W = Hp - 2, Wp - 2
    cols = [xp[:, i:i + H, j:j + W, :] for i in range(3) for j in range(3)]
    return jnp.concatenate(cols, axis=-1)


def _polyphase_weights(deconv_w):
    """ConvTranspose2d(k=3, s=2, p=1, op=1) weights (C_mid, C_out, 3, 3) ->
    (4*C_mid, 4*C_out) block matrix for the sub-pixel (polyphase) GEMM.

    LHS K-blocks are input shifts (di, dj) in order (0,0),(0,1),(1,0),(1,1);
    output N-blocks are output parities (r, c) in the same order. Output pixel
    (2i+r, 2j+c) = sum over valid shifts of h[i+di, j+dj] @ W[:, :, kh, kw]
    with kh = r+1-2*di, kw = c+1-2*dj (invalid taps are exact-zero blocks).
    """
    C_mid, C_out = deconv_w.shape[0], deconv_w.shape[1]
    w = deconv_w.astype(jnp.float32)
    zero = jnp.zeros((C_mid, C_out), jnp.float32)
    shift_index = {(0, 0): 0, (0, 1): 1, (1, 0): 2, (1, 1): 3}
    blocks = [[zero for _ in range(4)] for _ in range(4)]
    for r in range(2):
        for c in range(2):
            p = 2 * r + c
            for di in ((0,) if r == 0 else (0, 1)):
                for dj in ((0,) if c == 0 else (0, 1)):
                    kh = r + 1 - 2 * di
                    kw = c + 1 - 2 * dj
                    blocks[shift_index[(di, dj)]][p] = w[:, :, kh, kw]
    rows = [jnp.concatenate(b, axis=1) for b in blocks]
    return jnp.concatenate(rows, axis=0)


# ---------------------------------------------------------------------------
# Full _DecoderUpBlock forward.
# ---------------------------------------------------------------------------
@functools.partial(jax.jit, static_argnames=("eps",))
def decoder_up_block(x, params, *, eps=1e-5):
    """JAX/Pallas forward of _DecoderUpBlock (training-mode BatchNorm)."""
    N, C_in, H, W = x.shape
    C_mid = params["conv_w"].shape[0]
    C_out = params["deconv_w"].shape[1]
    alpha = params["prelu_alpha"]

    # --- ReflectionPad2d(1) + Conv2d(k3, s1, p0, bias=False) as im2col GEMM ---
    # TODO(synk): reflection pad / shift-concat / phase interleave are pure data
    # movement done by XLA; the 3x3 conv could further be split into 9
    # accumulated GEMMs over shifted row windows to avoid the 9x im2col bytes.
    x_nhwc = jnp.transpose(x, (0, 2, 3, 1)).astype(jnp.float32)
    xp = jnp.pad(x_nhwc, ((0, 0), (1, 1), (1, 1), (0, 0)), mode="reflect")
    xp = xp.astype(jnp.bfloat16)                                 # bf16 MXU operand
    lhs1 = _im2col_3x3(xp).reshape(N * H * W, 9 * C_in)
    rhs1 = jnp.transpose(params["conv_w"], (2, 3, 1, 0)).reshape(9 * C_in, C_mid)
    conv1, s1, sq1 = pallas_matmul_stats(lhs1, rhs1)             # (N*H*W, C_mid) f32

    # --- BatchNorm2d(C_mid) (batch stats from GEMM epilogue) + PReLU ---------
    m_cnt1 = N * H * W
    mean1 = s1 / m_cnt1
    var1 = jnp.maximum(sq1 / m_cnt1 - mean1 * mean1, 0.0)
    scale1 = params["bn1_gamma"] * lax.rsqrt(var1 + eps)
    shift1 = params["bn1_beta"] - mean1 * scale1
    h = pallas_affine_prelu(conv1, scale1, shift1, alpha, out_dtype=jnp.bfloat16)
    h = h.reshape(N, H, W, C_mid)

    # --- ConvTranspose2d(k3, s2, p1, op1) as a sub-pixel (polyphase) GEMM ----
    hp = jnp.pad(h, ((0, 0), (0, 1), (0, 1), (0, 0)))  # zero row/col for +1 shifts
    lhs2 = jnp.concatenate(
        [hp[:, 0:H, 0:W, :], hp[:, 0:H, 1:W + 1, :],
         hp[:, 1:H + 1, 0:W, :], hp[:, 1:H + 1, 1:W + 1, :]],
        axis=-1).reshape(N * H * W, 4 * C_mid)
    rhs2 = _polyphase_weights(params["deconv_w"])                # (4*C_mid, 4*C_out)
    conv2, s2, sq2 = pallas_matmul_stats(lhs2, rhs2)             # (N*H*W, 4*C_out)

    # --- BatchNorm2d(C_out) (batch stats) + PReLU ----------------------------
    # The deconv bias shifts both the values and the batch mean by the same
    # per-channel constant, so it cancels exactly under training-mode BN.
    m_cnt2 = N * (2 * H) * (2 * W)
    mean2 = jnp.sum(s2.reshape(4, C_out), axis=0) / m_cnt2
    var2 = jnp.maximum(jnp.sum(sq2.reshape(4, C_out), axis=0) / m_cnt2
                       - mean2 * mean2, 0.0)
    scale2 = params["bn2_gamma"] * lax.rsqrt(var2 + eps)
    shift2 = params["bn2_beta"] - mean2 * scale2
    scale2t = jnp.tile(scale2, 4)   # replicate per-channel affine over 4 parities
    shift2t = jnp.tile(shift2, 4)
    out = pallas_affine_prelu(conv2, scale2t, shift2t, alpha, out_dtype=jnp.float32)

    # Interleave the 4 parities into the (2H, 2W) output and go back to NCHW.
    out = out.reshape(N, H, W, 2, 2, C_out).transpose(0, 1, 3, 2, 4, 5)
    out = out.reshape(N, 2 * H, 2 * W, C_out).transpose(0, 3, 1, 2)
    return out.astype(x.dtype)


# ---------------------------------------------------------------------------
# Independent pure-jnp/lax f32 reference (for correctness check in __main__).
# ---------------------------------------------------------------------------
def _reference_block(x, p, eps=1e-5):
    alpha = p["prelu_alpha"]
    N, C_in, H, W = x.shape
    xp = jnp.pad(x, ((0, 0), (0, 0), (1, 1), (1, 1)), mode="reflect")
    c1 = lax.conv_general_dilated(
        xp.astype(jnp.float32), p["conv_w"].astype(jnp.float32),
        window_strides=(1, 1), padding="VALID",
        dimension_numbers=("NCHW", "OIHW", "NCHW"),
        precision=lax.Precision.HIGHEST)
    m1 = jnp.mean(c1, axis=(0, 2, 3), keepdims=True)
    v1 = jnp.var(c1, axis=(0, 2, 3), keepdims=True)
    h = (p["bn1_gamma"].reshape(1, -1, 1, 1) * (c1 - m1) * lax.rsqrt(v1 + eps)
         + p["bn1_beta"].reshape(1, -1, 1, 1))
    h = jnp.where(h >= 0, h, alpha * h)

    C_out = p["deconv_w"].shape[1]
    full = jnp.zeros((N, C_out, 2 * H + 1, 2 * W + 1), jnp.float32)
    for kh in range(3):
        for kw in range(3):
            contrib = jnp.einsum("nchw,cd->ndhw", h, p["deconv_w"][:, :, kh, kw],
                                 precision=lax.Precision.HIGHEST)
            full = full.at[:, :, kh:kh + 2 * H - 1:2, kw:kw + 2 * W - 1:2].add(contrib)
    c2 = full[:, :, 1:1 + 2 * H, 1:1 + 2 * W] + p["deconv_b"].reshape(1, -1, 1, 1)
    m2 = jnp.mean(c2, axis=(0, 2, 3), keepdims=True)
    v2 = jnp.var(c2, axis=(0, 2, 3), keepdims=True)
    o = (p["bn2_gamma"].reshape(1, -1, 1, 1) * (c2 - m2) * lax.rsqrt(v2 + eps)
         + p["bn2_beta"].reshape(1, -1, 1, 1))
    return jnp.where(o >= 0, o, alpha * o)


if __name__ == "__main__":
    key = jax.random.PRNGKey(0)
    ks = jax.random.split(key, 8)
    N, C_in, C_mid, C_out, H, W = 2, 4, 8, 4, 16, 16

    x = jax.random.normal(ks[0], (N, C_in, H, W), dtype=jnp.float32)
    params = {
        "conv_w": 0.3 * jax.random.normal(ks[1], (C_mid, C_in, 3, 3), jnp.float32),
        "bn1_gamma": 1.0 + 0.1 * jax.random.normal(ks[2], (C_mid,), jnp.float32),
        "bn1_beta": 0.1 * jax.random.normal(ks[3], (C_mid,), jnp.float32),
        "deconv_w": 0.3 * jax.random.normal(ks[4], (C_mid, C_out, 3, 3), jnp.float32),
        "deconv_b": 0.1 * jax.random.normal(ks[5], (C_out,), jnp.float32),
        "bn2_gamma": 1.0 + 0.1 * jax.random.normal(ks[6], (C_out,), jnp.float32),
        "bn2_beta": 0.1 * jax.random.normal(ks[7], (C_out,), jnp.float32),
        "prelu_alpha": jnp.array(0.25, jnp.float32),  # PyTorch PReLU() default init
    }

    y = jax.block_until_ready(decoder_up_block(x, params))
    assert y.shape == (N, C_out, 2 * H, 2 * W), y.shape
    assert y.dtype == x.dtype

    y_ref = _reference_block(x, params, eps=1e-5)
    abs_err = jnp.abs(y - y_ref)
    max_err = float(jnp.max(abs_err))
    mean_err = float(jnp.mean(abs_err))
    # bf16 MXU operands (f32 accumulation) vs a pure-f32 reference: structural
    # bugs show up as O(1) errors on BN-normalized outputs, rounding stays well
    # below these bounds.
    assert max_err < 1e-1, f"max abs err vs f32 reference: {max_err}"
    assert mean_err < 2e-2, f"mean abs err vs f32 reference: {mean_err}"

    print("KERNEL_OK")
</pallas_src>

<mosaic_0001>
module attributes {stable_mosaic.version = 11 : i64} {
  func.func @_matmul_stats_kernel(%arg0: i32, %arg1: i32, %arg2: i32, %arg3: memref<256x128xbf16, #tpu.memory_space<vmem>>, %arg4: memref<128x128xbf16, #tpu.memory_space<vmem>>, %arg5: memref<256x128xf32, #tpu.memory_space<vmem>>, %arg6: memref<1x1x128xf32, #tpu.memory_space<vmem>>, %arg7: memref<1x1x128xf32, #tpu.memory_space<vmem>>) attributes {dimension_semantics = [#tpu.dimension_semantics<parallel>, #tpu.dimension_semantics<parallel>, #tpu.dimension_semantics<arbitrary>], iteration_bounds = array<i64: 2, 1, 1>, scalar_prefetch = 0 : i64, scratch_operands = 0 : i64, tpu.core_type = #tpu.core_type<tc>, window_params = [{transform_indices = @transform_0, window_bounds = array<i64: 256, 128>}, {transform_indices = @transform_1, window_bounds = array<i64: 128, 128>}, {transform_indices = @transform_2, window_bounds = array<i64: 256, 128>}, {transform_indices = @transform_3, window_bounds = array<i64: 1, 1, 128>}, {transform_indices = @transform_4, window_bounds = array<i64: 1, 1, 128>}]} {
    %c0_i32 = arith.constant 0 : i32
    %0 = arith.cmpi eq, %arg2, %c0_i32 : i32
    %1 = arith.extui %0 : i1 to i32
    %c0_i32_0 = arith.constant 0 : i32
    %2 = arith.cmpi ne, %1, %c0_i32_0 : i32
    scf.if %2 {
      %cst_10 = arith.constant 0.000000e+00 : f32
      %12 = vector.broadcast %cst_10 : f32 to vector<256x128xf32>
      %c0_11 = arith.constant 0 : index
      %c0_12 = arith.constant 0 : index
      %13 = vector.load %arg5[%c0_11, %c0_12] : memref<256x128xf32, #tpu.memory_space<vmem>>, vector<256x128xf32>
      tpu.vector_store %arg5[%c0_11, %c0_12], %12 {strides = array<i32>} : memref<256x128xf32, #tpu.memory_space<vmem>>, vector<256x128xf32>,
    } else {
    }
    %c0 = arith.constant 0 : index
    %c0_1 = arith.constant 0 : index
    %3 = vector.load %arg5[%c0, %c0_1] : memref<256x128xf32, #tpu.memory_space<vmem>>, vector<256x128xf32>
    %c0_2 = arith.constant 0 : index
    %c0_3 = arith.constant 0 : index
    %4 = vector.load %arg3[%c0_2, %c0_3] : memref<256x128xbf16, #tpu.memory_space<vmem>>, vector<256x128xbf16>
    %c0_4 = arith.constant 0 : index
    %c0_5 = arith.constant 0 : index
    %5 = vector.load %arg4[%c0_4, %c0_5] : memref<128x128xbf16, #tpu.memory_space<vmem>>, vector<128x128xbf16>
    %cst = arith.constant dense<0.000000e+00> : vector<256x128xf32>
    %6 = tpu.matmul %4, %5, %cst {dimension_numbers = #tpu.dot_dimension_numbers<[1], [0], [0], [1], [0, 0, 1, 1], [], []>} : vector<256x128xbf16>, vector<128x128xbf16>, vector<256x128xf32> -> vector<256x128xf32>
    %7 = arith.addf %3, %6 : vector<256x128xf32>
    %c0_6 = arith.constant 0 : index
    %c0_7 = arith.constant 0 : index
    %8 = vector.load %arg5[%c0_6, %c0_7] : memref<256x128xf32, #tpu.memory_space<vmem>>, vector<256x128xf32>
    tpu.vector_store %arg5[%c0_6, %c0_7], %7 {strides = array<i32>} : memref<256x128xf32, #tpu.memory_space<vmem>>, vector<256x128xf32>,
    %c0_i32_8 = arith.constant 0 : i32
    %9 = arith.cmpi eq, %arg2, %c0_i32_8 : i32
    %10 = arith.extui %9 : i1 to i32
    %c0_i32_9 = arith.constant 0 : i32
    %11 = arith.cmpi ne, %10, %c0_i32_9 : i32
    scf.if %11 {
      %c0_10 = arith.constant 0 : index
      %c0_11 = arith.constant 0 : index
      %12 = vector.load %arg5[%c0_10, %c0_11] : memref<256x128xf32, #tpu.memory_space<vmem>>, vector<256x128xf32>
      %cst_12 = arith.constant dense<0.000000e+00> : vector<128xf32>
      %13 = vector.multi_reduction <add>, %12, %cst_12 [0] : vector<256x128xf32> to vector<128xf32>
      %14 = vector.shape_cast %13 : vector<128xf32> to vector<1x128xf32>
      %15 = vector.shape_cast %14 : vector<1x128xf32> to vector<1x1x128xf32>
      %c0_13 = arith.constant 0 : index
      %c0_14 = arith.constant 0 : index
      %c0_15 = arith.constant 0 : index
      %16 = vector.load %arg6[%c0_13, %c0_14, %c0_15] : memref<1x1x128xf32, #tpu.memory_space<vmem>>, vector<1x1x128xf32>
      tpu.vector_store %arg6[%c0_13, %c0_14, %c0_15], %15 {strides = array<i32>} : memref<1x1x128xf32, #tpu.memory_space<vmem>>, vector<1x1x128xf32>,
      %17 = arith.mulf %12, %12 : vector<256x128xf32>
      %cst_16 = arith.constant dense<0.000000e+00> : vector<128xf32>
      %18 = vector.multi_reduction <add>, %17, %cst_16 [0] : vector<256x128xf32> to vector<128xf32>
      %19 = vector.shape_cast %18 : vector<128xf32> to vector<1x128xf32>
      %20 = vector.shape_cast %19 : vector<1x128xf32> to vector<1x1x128xf32>
      %c0_17 = arith.constant 0 : index
      %c0_18 = arith.constant 0 : index
      %c0_19 = arith.constant 0 : index
      %21 = vector.load %arg7[%c0_17, %c0_18, %c0_19] : memref<1x1x128xf32, #tpu.memory_space<vmem>>, vector<1x1x128xf32>
      tpu.vector_store %arg7[%c0_17, %c0_18, %c0_19], %20 {strides = array<i32>} : memref<1x1x128xf32, #tpu.memory_space<vmem>>, vector<1x1x128xf32>,
    } else {
    }
    return
  }
  func.func @transform_0(%arg0: i32, %arg1: i32, %arg2: i32) -> (i32, i32) {
    %c0_i32 = arith.constant 0 : i32
    return %arg0, %arg2 : i32, i32
  }
  func.func @transform_1(%arg0: i32, %arg1: i32, %arg2: i32) -> (i32, i32) {
    %c0_i32 = arith.constant 0 : i32
    return %arg2, %arg1 : i32, i32
  }
  func.func @transform_2(%arg0: i32, %arg1: i32, %arg2: i32) -> (i32, i32) {
    %c0_i32 = arith.constant 0 : i32
    return %arg0, %arg1 : i32, i32
  }
  func.func @transform_3(%arg0: i32, %arg1: i32, %arg2: i32) -> (i32, i32, i32) {
    %c0_i32 = arith.constant 0 : i32
    %c0_i32_0 = arith.constant 0 : i32
    return %arg0, %c0_i32, %arg1 : i32, i32, i32
  }
  func.func @transform_4(%arg0: i32, %arg1: i32, %arg2: i32) -> (i32, i32, i32) {
    %c0_i32 = arith.constant 0 : i32
    %c0_i32_0 = arith.constant 0 : i32
    return %arg0, %c0_i32, %arg1 : i32, i32, i32
  }
}

module attributes {stable_mosaic.version = 11 : i64} {
  func.func @_affine_prelu_kernel(%arg0: i32, %arg1: memref<256x8xf32, #tpu.memory_space<vmem>>, %arg2: memref<1x8xf32, #tpu.memory_space<vmem>>, %arg3: memref<1x8xf32, #tpu.memory_space<vmem>>, %arg4: memref<1x1xf32, #tpu.memory_space<vmem>>, %arg5: memref<256x8xbf16, #tpu.memory_space<vmem>>) attributes {dimension_semantics = [#tpu.dimension_semantics<parallel>], iteration_bounds = array<i64: 2>, scalar_prefetch = 0 : i64, scratch_operands = 0 : i64, tpu.core_type = #tpu.core_type<tc>, window_params = [{transform_indices = @transform_0, window_bounds = array<i64: 256, 8>}, {pipeline_mode = #tpu.pipeline_mode<synchronous>, transform_indices = @transform_1, window_bounds = array<i64: 1, 8>}, {pipeline_mode = #tpu.pipeline_mode<synchronous>, transform_indices = @transform_2, window_bounds = array<i64: 1, 8>}, {pipeline_mode = #tpu.pipeline_mode<synchronous>, transform_indices = @transform_3, window_bounds = array<i64: 1, 1>}, {transform_indices = @transform_4, window_bounds = array<i64: 256, 8>}]} {
    %c0 = arith.constant 0 : index
    %c0_0 = arith.constant 0 : index
    %0 = vector.load %arg1[%c0, %c0_0] : memref<256x8xf32, #tpu.memory_space<vmem>>, vector<256x8xf32>
    %c0_1 = arith.constant 0 : index
    %c0_2 = arith.constant 0 : index
    %1 = vector.load %arg2[%c0_1, %c0_2] : memref<1x8xf32, #tpu.memory_space<vmem>>, vector<1x8xf32>
    %2 = vector.broadcast %1 : vector<1x8xf32> to vector<256x8xf32>
    %3 = arith.mulf %0, %2 : vector<256x8xf32>
    %c0_3 = arith.constant 0 : index
    %c0_4 = arith.constant 0 : index
    %4 = vector.load %arg3[%c0_3, %c0_4] : memref<1x8xf32, #tpu.memory_space<vmem>>, vector<1x8xf32>
    %5 = vector.broadcast %4 : vector<1x8xf32> to vector<256x8xf32>
    %6 = arith.addf %3, %5 : vector<256x8xf32>
    %cst = arith.constant 0.000000e+00 : f32
    %7 = vector.broadcast %cst : f32 to vector<256x8xf32>
    %8 = arith.cmpf oge, %6, %7 : vector<256x8xf32>
    %c0_5 = arith.constant 0 : index
    %c0_6 = arith.constant 0 : index
    %9 = vector.load %arg4[%c0_5, %c0_6] : memref<1x1xf32, #tpu.memory_space<vmem>>, vector<1x1xf32>
    %10 = vector.broadcast %9 : vector<1x1xf32> to vector<256x8xf32>
    %11 = arith.mulf %6, %10 : vector<256x8xf32>
    %12 = arith.select %8, %6, %11 : vector<256x8xi1>, vector<256x8xf32>
    %13 = arith.truncf %12 : vector<256x8xf32> to vector<256x8xbf16>
    %c0_7 = arith.constant 0 : index
    %c0_8 = arith.constant 0 : index
    %14 = vector.load %arg5[%c0_7, %c0_8] : memref<256x8xbf16, #tpu.memory_space<vmem>>, vector<256x8xbf16>
    tpu.vector_store %arg5[%c0_7, %c0_8], %13 {strides = array<i32>} : memref<256x8xbf16, #tpu.memory_space<vmem>>, vector<256x8xbf16>,
    return
  }
  func.func @transform_0(%arg0: i32) -> (i32, i32) {
    %c0_i32 = arith.constant 0 : i32
    %c0_i32_0 = arith.constant 0 : i32
    return %arg0, %c0_i32 : i32, i32
  }
  func.func @transform_1(%arg0: i32) -> (i32, i32) {
    %c0_i32 = arith.constant 0 : i32
    %c0_i32_0 = arith.constant 0 : i32
    %c0_i32_1 = arith.constant 0 : i32
    return %c0_i32, %c0_i32_0 : i32, i32
  }
  func.func @transform_2(%arg0: i32) -> (i32, i32) {
    %c0_i32 = arith.constant 0 : i32
    %c0_i32_0 = arith.constant 0 : i32
    %c0_i32_1 = arith.constant 0 : i32
    return %c0_i32, %c0_i32_0 : i32, i32
  }
  func.func @transform_3(%arg0: i32) -> (i32, i32) {
    %c0_i32 = arith.constant 0 : i32
    %c0_i32_0 = arith.constant 0 : i32
    %c0_i32_1 = arith.constant 0 : i32
    return %c0_i32, %c0_i32_0 : i32, i32
  }
  func.func @transform_4(%arg0: i32) -> (i32, i32) {
    %c0_i32 = arith.constant 0 : i32
    %c0_i32_0 = arith.constant 0 : i32
    return %arg0, %c0_i32 : i32, i32
  }
}

module attributes {stable_mosaic.version = 11 : i64} {
  func.func @_affine_prelu_kernel(%arg0: i32, %arg1: memref<256x16xf32, #tpu.memory_space<vmem>>, %arg2: memref<1x16xf32, #tpu.memory_space<vmem>>, %arg3: memref<1x16xf32, #tpu.memory_space<vmem>>, %arg4: memref<1x1xf32, #tpu.memory_space<vmem>>, %arg5: memref<256x16xf32, #tpu.memory_space<vmem>>) attributes {dimension_semantics = [#tpu.dimension_semantics<parallel>], iteration_bounds = array<i64: 2>, scalar_prefetch = 0 : i64, scratch_operands = 0 : i64, tpu.core_type = #tpu.core_type<tc>, window_params = [{transform_indices = @transform_0, window_bounds = array<i64: 256, 16>}, {pipeline_mode = #tpu.pipeline_mode<synchronous>, transform_indices = @transform_1, window_bounds = array<i64: 1, 16>}, {pipeline_mode = #tpu.pipeline_mode<synchronous>, transform_indices = @transform_2, window_bounds = array<i64: 1, 16>}, {pipeline_mode = #tpu.pipeline_mode<synchronous>, transform_indices = @transform_3, window_bounds = array<i64: 1, 1>}, {transform_indices = @transform_4, window_bounds = array<i64: 256, 16>}]} {
    %c0 = arith.constant 0 : index
    %c0_0 = arith.constant 0 : index
    %0 = vector.load %arg1[%c0, %c0_0] : memref<256x16xf32, #tpu.memory_space<vmem>>, vector<256x16xf32>
    %c0_1 = arith.constant 0 : index
    %c0_2 = arith.constant 0 : index
    %1 = vector.load %arg2[%c0_1, %c0_2] : memref<1x16xf32, #tpu.memory_space<vmem>>, vector<1x16xf32>
    %2 = vector.broadcast %1 : vector<1x16xf32> to vector<256x16xf32>
    %3 = arith.mulf %0, %2 : vector<256x16xf32>
    %c0_3 = arith.constant 0 : index
    %c0_4 = arith.constant 0 : index
    %4 = vector.load %arg3[%c0_3, %c0_4] : memref<1x16xf32, #tpu.memory_space<vmem>>, vector<1x16xf32>
    %5 = vector.broadcast %4 : vector<1x16xf32> to vector<256x16xf32>
    %6 = arith.addf %3, %5 : vector<256x16xf32>
    %cst = arith.constant 0.000000e+00 : f32
    %7 = vector.broadcast %cst : f32 to vector<256x16xf32>
    %8 = arith.cmpf oge, %6, %7 : vector<256x16xf32>
    %c0_5 = arith.constant 0 : index
    %c0_6 = arith.constant 0 : index
    %9 = vector.load %arg4[%c0_5, %c0_6] : memref<1x1xf32, #tpu.memory_space<vmem>>, vector<1x1xf32>
    %10 = vector.broadcast %9 : vector<1x1xf32> to vector<256x16xf32>
    %11 = arith.mulf %6, %10 : vector<256x16xf32>
    %12 = arith.select %8, %6, %11 : vector<256x16xi1>, vector<256x16xf32>
    %c0_7 = arith.constant 0 : index
    %c0_8 = arith.constant 0 : index
    %13 = vector.load %arg5[%c0_7, %c0_8] : memref<256x16xf32, #tpu.memory_space<vmem>>, vector<256x16xf32>
    tpu.vector_store %arg5[%c0_7, %c0_8], %12 {strides = array<i32>} : memref<256x16xf32, #tpu.memory_space<vmem>>, vector<256x16xf32>,
    return
  }
  func.func @transform_0(%arg0: i32) -> (i32, i32) {
    %c0_i32 = arith.constant 0 : i32
    %c0_i32_0 = arith.constant 0 : i32
    return %arg0, %c0_i32 : i32, i32
  }
  func.func @transform_1(%arg0: i32) -> (i32, i32) {
    %c0_i32 = arith.constant 0 : i32
    %c0_i32_0 = arith.constant 0 : i32
    %c0_i32_1 = arith.constant 0 : i32
    return %c0_i32, %c0_i32_0 : i32, i32
  }
  func.func @transform_2(%arg0: i32) -> (i32, i32) {
    %c0_i32 = arith.constant 0 : i32
    %c0_i32_0 = arith.constant 0 : i32
    %c0_i32_1 = arith.constant 0 : i32
    return %c0_i32, %c0_i32_0 : i32, i32
  }
  func.func @transform_3(%arg0: i32) -> (i32, i32) {
    %c0_i32 = arith.constant 0 : i32
    %c0_i32_0 = arith.constant 0 : i32
    %c0_i32_1 = arith.constant 0 : i32
    return %c0_i32, %c0_i32_0 : i32, i32
  }
  func.func @transform_4(%arg0: i32) -> (i32, i32) {
    %c0_i32 = arith.constant 0 : i32
    %c0_i32_0 = arith.constant 0 : i32
    return %arg0, %c0_i32 : i32, i32
  }
}

</mosaic_0001>

<bundles_post_ra>
// kernel: decoder_up_block.5
= control target key start
LH: loop header
LB: loop body
LE: loop exit
PB: predicated region body
PF: predicated region fallthrough
CT: control target
= control target key end

     0   :  { %s761_s17 = smov 0   ;;  %s1228_s0 = inlined_call_operand.vmem [shape: f32[512,8], index: 0, kind: input, shape index: {}]   ;;  %s1229_s1 = inlined_call_operand.vmem [shape: f32[1,8], index: 1, kind: input, shape index: {}]   ;;  %s1230_s2 = inlined_call_operand.vmem [shape: f32[1,8], index: 2, kind: input, shape index: {}]   ;;  %s1231_s3 = inlined_call_operand.<no memory space> [shape: f32[1,1], index: 3, kind: input, shape index: {}]   ;;  %s1232_s4 = inlined_call_operand.vmem [shape: bf16[512,8], index: 4, kind: output, shape index: {}]  }
   0x1   :  { %v9_v0 = vstv %s1231_s3 }
   0x2   :  { %10 = vst [vmem:[#allocation2] sm:$0x1] %v9_v0 }
   0x3 LB: > { %s636_s18 = sadd.s32 4294967295, %s730_s17   ;;  %p640_p0 = scmp.ge.s32.totalorder %s730_s17, 1  ;;  %s730_s17 = sphi %s761_s17, %s16_s17  }
   0x4   : > { %p165_p1 = scmp.lt.s32.totalorder %s730_s17, 3 }
   0x6   : > { %p166_p2 = pnand %p640_p0, %p165_p1 }
   0x8   : > { %169 = sbr.rel (%p166_p2) target bundleno = 178 (0xb2), region = 36 }
   0xd   : > { %v647_v1 = vld [vmem:[#allocation2] ss:$0 sm:$0xff]  ;;  %v732_v2 = vmov 0   ;;  %s641_s3 = sshll.u32 %s636_s18, 5  ;;  %vm547_vm12 = vcmask 60416  }
   0xe   : > { %723 = vset.pattern.permute.xlu0 %v732_v2  ;;  %p192_p3 = scmp.lt.s32.totalorder %s641_s3, 63  ;;  %v781_v4 = vld [vmem:[%s1229_s1] ss:$0 sm:$0xff] }
   0xf   : > { %352 = vperm.xlu0 %723, %v647_v1   ;;  %v790_v9 = vld [vmem:[%s1230_s2] ss:$0 sm:$0xff] }
  0x10   : > { %s1271_s3 = smov (!%p192_p3, %s641_s3), 63 }
  0x11   : > { %s642_s19 = sshll.u32 %s1271_s3, 3  ;;  %s644_s27 = sshll.u32 %s1271_s3, 2 }
  0x12   : > { %s775_s22 = scalar_lea.vmem %s1228_s0, %s642_s19  ;;  %s1115_s30 = scalar_lea.vmem %s1232_s4, %s644_s27 }
  0x13   : > { %v203_v3 = vld [vmem:[%s775_s22] sm:$0xff]  ;;  %v204_v5 = vld [vmem:[%s775_s22 + $0x8] sm:$0xff]  ;;  %v205_v6 = vld [vmem:[%s775_s22 + $0x10] sm:$0xff] }
  0x14   : > { %v206_v7 = vld [vmem:[%s775_s22 + $0x18] sm:$0xff]  ;;  %v207_v8 = vld [vmem:[%s775_s22 + $0x20] sm:$0xff]  ;;  %v208_v10 = vld [vmem:[%s775_s22 + $0x28] sm:$0xff]  ;;  %v242_v13 = vmul.f32 %v781_v4, %v203_v3  ;;  %v243_v17 = vmul.f32 %v781_v4, %v204_v5  ;;  %v244_v21 = vmul.f32 %v781_v4, %v205_v6 }
  0x15   : > { %v209_v11 = vld [vmem:[%s775_s22 + $0x30] sm:$0xff]  ;;  %v210_v12 = vld [vmem:[%s775_s22 + $0x38] sm:$0xff]  ;;  %v211_v14 = vld [vmem:[%s775_s22 + $0x40] sm:$0xff]  ;;  %v245_v22 = vmul.f32 %v781_v4, %v206_v7  ;;  %v246_v26 = vmul.f32 %v781_v4, %v207_v8  ;;  %v247_v27 = vmul.f32 %v781_v4, %v208_v10 }
  0x16   : > { %v212_v15 = vld [vmem:[%s775_s22 + $0x48] sm:$0xff]  ;;  %v213_v16 = vld [vmem:[%s775_s22 + $0x50] sm:$0xff]  ;;  %v214_v18 = vld [vmem:[%s775_s22 + $0x58] sm:$0xff]  ;;  %v248_v28 = vmul.f32 %v781_v4, %v209_v11  ;;  %v249_v29 = vmul.f32 %v781_v4, %v210_v12  ;;  %v250_v33 = vmul.f32 %v781_v4, %v211_v14  ;;  %v819_v36 = vadd.f32 %v790_v9, %v242_v13 }
  0x17   : > { %v215_v19 = vld [vmem:[%s775_s22 + $0x60] sm:$0xff]  ;;  %v216_v20 = vld [vmem:[%s775_s22 + $0x68] sm:$0xff]  ;;  %v217_v23 = vld [vmem:[%s775_s22 + $0x70] sm:$0xff]  ;;  %v251_v34 = vmul.f32 %v781_v4, %v212_v15  ;;  %v252_v35 = vmul.f32 %v781_v4, %v213_v16  ;;  %v253_v40 = vmul.f32 %v781_v4, %v214_v18  ;;  %v828_v43 = vadd.f32 %v790_v9, %v243_v17 }
  0x18   : > { %v218_v24 = vld [vmem:[%s775_s22 + $0x78] sm:$0xff]  ;;  %v219_v25 = vld [vmem:[%s775_s22 + $0x80] sm:$0xff]  ;;  %v220_v30 = vld [vmem:[%s775_s22 + $0x88] sm:$0xff]  ;;  %v254_v41 = vmul.f32 %v781_v4, %v215_v19  ;;  %v255_v42 = vmul.f32 %v781_v4, %v216_v20  ;;  %v256_v47 = vmul.f32 %v781_v4, %v217_v23  ;;  %v837_v50 = vadd.f32 %v790_v9, %v244_v21 }
  0x19   : > { %v221_v31 = vld [vmem:[%s775_s22 + $0x90] sm:$0xff]  ;;  %v222_v32 = vld [vmem:[%s775_s22 + $0x98] sm:$0xff]  ;;  %v223_v37 = vld [vmem:[%s775_s22 + $0xa0] sm:$0xff]  ;;  %v257_v48 = vmul.f32 %v781_v4, %v218_v24  ;;  %v258_v49 = vmul.f32 %v781_v4, %v219_v25  ;;  %v259_v54 = vmul.f32 %v781_v4, %v220_v30  ;;  %v846_v57 = vadd.f32 %v790_v9, %v245_v22 }
  0x1a   : > { %v224_v38 = vld [vmem:[%s775_s22 + $0xa8] sm:$0xff]  ;;  %v225_v39 = vld [vmem:[%s775_s22 + $0xb0] sm:$0xff]  ;;  %v226_v44 = vld [vmem:[%s775_s22 + $0xb8] sm:$0xff]  ;;  %v260_v55 = vmul.f32 %v781_v4, %v221_v31  ;;  %v261_v56 = vmul.f32 %v781_v4, %v222_v32  ;;  %v262_v61 = vmul.f32 %v781_v4, %v223_v37  ;;  %v855_v0 = vadd.f32 %v790_v9, %v246_v26 }
  0x1b   : > { %v227_v45 = vld [vmem:[%s775_s22 + $0xc0] sm:$0xff]  ;;  %v228_v46 = vld [vmem:[%s775_s22 + $0xc8] sm:$0xff]  ;;  %v229_v51 = vld [vmem:[%s775_s22 + $0xd0] sm:$0xff]  ;;  %v263_v62 = vmul.f32 %v781_v4, %v224_v38  ;;  %v264_v63 = vmul.f32 %v781_v4, %v225_v39  ;;  %v265_v1 = vmul.f32 %v781_v4, %v226_v44  ;;  %v861_v5 = vadd.f32 %v790_v9, %v247_v27 }
  0x1c   : > { %v230_v52 = vld [vmem:[%s775_s22 + $0xd8] sm:$0xff]  ;;  %v231_v53 = vld [vmem:[%s775_s22 + $0xe0] sm:$0xff]  ;;  %v232_v58 = vld [vmem:[%s775_s22 + $0xe8] sm:$0xff]  ;;  %v266_v2 = vmul.f32 %v781_v4, %v227_v45  ;;  %v267_v3 = vmul.f32 %v781_v4, %v228_v46  ;;  %v268_v6 = vmul.f32 %v781_v4, %v229_v51  ;;  %v867_v10 = vadd.f32 %v790_v9, %v248_v28 }
  0x1d   : > { %v233_v59 = vld [vmem:[%s775_s22 + $0xf0] sm:$0xff]  ;;  %v234_v60 = vld [vmem:[%s775_s22 + $0xf8] sm:$0xff]  ;;  %v269_v7 = vmul.f32 %v781_v4, %v230_v52  ;;  %v270_v8 = vmul.f32 %v781_v4, %v231_v53  ;;  %v271_v11 = vmul.f32 %v781_v4, %v232_v58  ;;  %v873_v14 = vadd.f32 %v790_v9, %v249_v29 }
  0x1e   : > { %v272_v12 = vmul.f32 %v781_v4, %v233_v59  ;;  %v273_v13 = vmul.f32 %v781_v4, %v234_v60  ;;  %v876_v15 = vadd.f32 %v790_v9, %v250_v33  ;;  %v879_v16 = vadd.f32 %v790_v9, %v251_v34 }
  0x1f   : > { %v882_v17 = vadd.f32 %v790_v9, %v252_v35  ;;  %v885_v18 = vadd.f32 %v790_v9, %v253_v40  ;;  %v888_v19 = vadd.f32 %v790_v9, %v254_v41  ;;  %v891_v4 = vadd.f32 %v790_v9, %v255_v42 }
  0x20   : > { %v894_v20 = vadd.f32 %v790_v9, %v256_v47  ;;  %v897_v21 = vadd.f32 %v790_v9, %v257_v48  ;;  %v900_v22 = vadd.f32 %v790_v9, %v258_v49  ;;  %v903_v23 = vadd.f32 %v790_v9, %v259_v54 }
  0x21   : > { %v906_v24 = vadd.f32 %v790_v9, %v260_v55  ;;  %v909_v25 = vadd.f32 %v790_v9, %v261_v56  ;;  %v912_v26 = vadd.f32 %v790_v9, %v262_v61  ;;  %v915_v27 = vadd.f32 %v790_v9, %v263_v62 }
  0x22   : > { %v918_v28 = vadd.f32 %v790_v9, %v264_v63  ;;  %v921_v29 = vadd.f32 %v790_v9, %v265_v1  ;;  %v924_v30 = vadd.f32 %v790_v9, %v266_v2  ;;  %v927_v31 = vadd.f32 %v790_v9, %v267_v3 }
  0x23   : > { %1243 = vst [vmem:[#allocation3_spill] sm:$0xff] %v915_v27  ;;  %v930_v32 = vadd.f32 %v790_v9, %v268_v6  ;;  %v933_v33 = vadd.f32 %v790_v9, %v269_v7  ;;  %v936_v34 = vadd.f32 %v790_v9, %v270_v8  ;;  %v939_v35 = vadd.f32 %v790_v9, %v271_v11 }
  0x24   : > { %1244 = vst [vmem:[#allocation4_spill] sm:$0xff] %v921_v29  ;;  %v942_v37 = vadd.f32 %v790_v9, %v272_v12  ;;  %v945_v38 = vadd.f32 %v790_v9, %v273_v13  ;;  %vm313_vm0 = vcmp.ge.f32.partialorder %v819_v36, 0.0  ;;  %vm314_vm1 = vcmp.ge.f32.partialorder %v828_v43, 0.0 }
  0x25   : > { %1245 = vst [vmem:[#allocation5_spill] sm:$0xff] %v930_v32  ;;  %1246 = vst [vmem:[#allocation6_spill] sm:$0xff] %v936_v34  ;;  %vm315_vm2 = vcmp.ge.f32.partialorder %v837_v50, 0.0  ;;  %vm316_vm3 = vcmp.ge.f32.partialorder %v846_v57, 0.0  ;;  %vm317_vm4 = vcmp.ge.f32.partialorder %v855_v0, 0.0  ;;  %vm318_vm5 = vcmp.ge.f32.partialorder %v861_v5, 0.0 }
  0x26   : > { %1247 = vst [vmem:[#allocation7_spill] sm:$0xff] %v942_v37  ;;  %vm319_vm6 = vcmp.ge.f32.partialorder %v867_v10, 0.0  ;;  %vm320_vm7 = vcmp.ge.f32.partialorder %v873_v14, 0.0  ;;  %vm321_vm8 = vcmp.ge.f32.partialorder %v876_v15, 0.0  ;;  %vm322_vm9 = vcmp.ge.f32.partialorder %v879_v16, 0.0 }
  0x27   : > { %vm339_vm15 = vcmp.ge.f32.partialorder %v930_v32, 0.0  ;;  %vm340_vm14 = vcmp.ge.f32.partialorder %v933_v33, 0.0  ;;  %vm341_vm11 = vcmp.ge.f32.partialorder %v936_v34, 0.0  ;;  %vm342_vm10 = vcmp.ge.f32.partialorder %v939_v35, 0.0 }
  0x28   : > { %vm343_vm13 = vcmp.ge.f32.partialorder %v942_v37, 0.0 }
  0x8a   : > { %v353_v39 = vpop.permute.xlu0 %352 }
  0x8b   : > { %v355_v9 = vmul.f32 %v353_v39, %v819_v36  ;;  %v356_v40 = vmul.f32 %v353_v39, %v828_v43  ;;  %v357_v41 = vmul.f32 %v353_v39, %v837_v50  ;;  %v358_v42 = vmul.f32 %v353_v39, %v846_v57 }
  0x8c   : > { %v359_v44 = vmul.f32 %v353_v39, %v855_v0  ;;  %v360_v45 = vmul.f32 %v353_v39, %v861_v5  ;;  %v361_v46 = vmul.f32 %v353_v39, %v867_v10  ;;  %v362_v47 = vmul.f32 %v353_v39, %v873_v14 }
  0x8d   : > { %v363_v48 = vmul.f32 %v353_v39, %v876_v15  ;;  %v364_v49 = vmul.f32 %v353_v39, %v879_v16  ;;  %v365_v51 = vmul.f32 %v353_v39, %v882_v17  ;;  %v366_v52 = vmul.f32 %v353_v39, %v885_v18 }
  0x8e   : > { %v367_v53 = vmul.f32 %v353_v39, %v888_v19  ;;  %v368_v54 = vmul.f32 %v353_v39, %v891_v4  ;;  %v369_v55 = vmul.f32 %v353_v39, %v894_v20  ;;  %v370_v56 = vmul.f32 %v353_v39, %v897_v21 }
  0x8f   : > { %v371_v58 = vmul.f32 %v353_v39, %v900_v22  ;;  %v372_v59 = vmul.f32 %v353_v39, %v903_v23  ;;  %v373_v60 = vmul.f32 %v353_v39, %v906_v24  ;;  %v374_v61 = vmul.f32 %v353_v39, %v909_v25 }
  0x90   : > { %v375_v62 = vmul.f32 %v353_v39, %v912_v26  ;;  %v376_v63 = vmul.f32 %v353_v39, %v915_v27  ;;  %v377_v1 = vmul.f32 %v353_v39, %v918_v28  ;;  %v378_v2 = vmul.f32 %v353_v39, %v921_v29 }
  0x91   : > { %v379_v3 = vmul.f32 %v353_v39, %v924_v30  ;;  %v380_v6 = vmul.f32 %v353_v39, %v927_v31  ;;  %v381_v7 = vmul.f32 %v353_v39, %v930_v32  ;;  %v382_v8 = vmul.f32 %v353_v39, %v933_v33 }
  0x92   : > { %v383_v11 = vmul.f32 %v353_v39, %v936_v34  ;;  %v384_v12 = vmul.f32 %v353_v39, %v939_v35  ;;  %v385_v13 = vmul.f32 %v353_v39, %v942_v37  ;;  %v386_v27 = vmul.f32 %v353_v39, %v945_v38 }
  0x93   : > { %v387_v29 = vsel %vm313_vm0, %v819_v36, %v355_v9  ;;  %v388_v32 = vsel %vm314_vm1, %v828_v43, %v356_v40  ;;  %v389_v34 = vsel %vm315_vm2, %v837_v50, %v357_v41  ;;  %v390_v37 = vsel %vm316_vm3, %v846_v57, %v358_v42  ;;  %v1259_v9 = vld [vmem:[#allocation3_spill] sm:$0xff]  ;;  %v1266_v41 = vld [vmem:[#allocation5_spill] sm:$0xff] }
  0x94   : > { %v391_v39 = vsel %vm317_vm4, %v855_v0, %v359_v44  ;;  %v392_v36 = vsel %vm318_vm5, %v861_v5, %v360_v45  ;;  %v393_v43 = vsel %vm319_vm6, %v867_v10, %v361_v46  ;;  %v394_v50 = vsel %vm320_vm7, %v873_v14, %v362_v47  ;;  %v1268_v45 = vld [vmem:[#allocation7_spill] sm:$0xff] }
  0x95   : > { %v395_v57 = vsel %vm321_vm8, %v876_v15, %v363_v48  ;;  %v396_v0 = vsel %vm322_vm9, %v879_v16, %v364_v49  ;;  %vm1248_vm0 = vcmp.ge.f32.partialorder %v882_v17, 0.0  ;;  %vm1249_vm1 = vcmp.ge.f32.partialorder %v885_v18, 0.0 }
  0x96   : > { %v397_v5 = vsel %vm1248_vm0, %v882_v17, %v365_v51  ;;  %v398_v10 = vsel %vm1249_vm1, %v885_v18, %v366_v52  ;;  %vm1250_vm2 = vcmp.ge.f32.partialorder %v888_v19, 0.0  ;;  %vm1251_vm3 = vcmp.ge.f32.partialorder %v891_v4, 0.0 }
  0x97   : > { %v399_v14 = vsel %vm1250_vm2, %v888_v19, %v367_v53  ;;  %v400_v15 = vsel %vm1251_vm3, %v891_v4, %v368_v54  ;;  %vm1252_vm4 = vcmp.ge.f32.partialorder %v894_v20, 0.0  ;;  %vm1253_vm5 = vcmp.ge.f32.partialorder %v897_v21, 0.0 }
  0x98   : > { %v401_v16 = vsel %vm1252_vm4, %v894_v20, %v369_v55  ;;  %v402_v17 = vsel %vm1253_vm5, %v897_v21, %v370_v56  ;;  %vm1254_vm6 = vcmp.ge.f32.partialorder %v900_v22, 0.0  ;;  %vm1255_vm7 = vcmp.ge.f32.partialorder %v903_v23, 0.0 }
  0x99   : > { %v403_v18 = vsel %vm1254_vm6, %v900_v22, %v371_v58  ;;  %v404_v19 = vsel %vm1255_vm7, %v903_v23, %v372_v59  ;;  %vm1256_vm8 = vcmp.ge.f32.partialorder %v906_v24, 0.0  ;;  %vm1257_vm9 = vcmp.ge.f32.partialorder %v909_v25, 0.0 }
  0x9a   : > { %v405_v4 = vsel %vm1256_vm8, %v906_v24, %v373_v60  ;;  %v406_v20 = vsel %vm1257_vm9, %v909_v25, %v374_v61  ;;  %vm1258_vm0 = vcmp.ge.f32.partialorder %v912_v26, 0.0  ;;  %vm1260_vm1 = vcmp.ge.f32.partialorder %v1259_v9, 0.0  ;;  %v1262_v24 = vld [vmem:[#allocation4_spill] sm:$0xff] }
  0x9b   : > { %v1075_v21 = vsel %vm1258_vm0, %v912_v26, %v375_v62  ;;  %v1080_v22 = vsel %vm1260_vm1, %v1259_v9, %v376_v63  ;;  %vm1261_vm2 = vcmp.ge.f32.partialorder %v918_v28, 0.0  ;;  %vm1263_vm3 = vcmp.ge.f32.partialorder %v1262_v24, 0.0 }
  0x9c   : > { %v1085_v23 = vsel %vm1261_vm2, %v918_v28, %v377_v1  ;;  %v1090_v40 = vsel %vm1263_vm3, %v1262_v24, %v378_v2  ;;  %vm1264_vm4 = vcmp.ge.f32.partialorder %v924_v30, 0.0  ;;  %vm1265_vm5 = vcmp.ge.f32.partialorder %v927_v31, 0.0 }
  0x9d   : > { %v1095_v25 = vsel %vm1264_vm4, %v924_v30, %v379_v3  ;;  %v1100_v26 = vsel %vm1265_vm5, %v927_v31, %v380_v6  ;;  %v1105_v28 = vsel %vm339_vm15, %v1266_v41, %v381_v7  ;;  %v1110_v42 = vsel %vm340_vm14, %v933_v33, %v382_v8  ;;  %v1267_v30 = vld [vmem:[#allocation6_spill] sm:$0xff] }
  0x9e   : > { %v1120_v31 = vsel %vm341_vm11, %v1267_v30, %v383_v11  ;;  %v1125_v44 = vsel %vm342_vm10, %v939_v35, %v384_v12  ;;  %v1130_v33 = vsel %vm343_vm13, %v1268_v45, %v385_v13  ;;  %vm1269_vm14 = vcmp.ge.f32.partialorder %v945_v38, 0.0 }
  0x9f   : > { %v1135_v46 = vsel %vm1269_vm14, %v945_v38, %v386_v27  ;;  %v682_v47 = vpack.c.bf16 %v387_v29, %v387_v29  ;;  %v683_v48 = vpack.c.bf16 %v388_v32, %v388_v32  ;;  %v684_v49 = vpack.c.bf16 %v389_v34, %v389_v34 }
  0xa0   : > { %v685_v51 = vpack.c.bf16 %v390_v37, %v390_v37  ;;  %v686_v52 = vpack.c.bf16 %v391_v39, %v391_v39  ;;  %v687_v35 = vpack.c.bf16 %v392_v36, %v392_v36  ;;  %v688_v53 = vpack.c.bf16 %v393_v43, %v393_v43 }
  0xa1   : > { %v689_v54 = vpack.c.bf16 %v394_v50, %v394_v50  ;;  %v690_v55 = vpack.c.bf16 %v395_v57, %v395_v57  ;;  %v691_v56 = vpack.c.bf16 %v396_v0, %v396_v0  ;;  %v692_v58 = vpack.c.bf16 %v397_v5, %v397_v5  ;;  %548 = vst.msk [vmem:[%s1115_s30] sm:$0xf] %vm547_vm12, %v682_v47 }
  0xa2   : > { %v693_v59 = vpack.c.bf16 %v398_v10, %v398_v10  ;;  %549 = vst.msk [vmem:[%s1115_s30 + $0x4] sm:$0xf] %vm547_vm12, %v683_v48  ;;  %550 = vst.msk [vmem:[%s1115_s30 + $0x8] sm:$0xf] %vm547_vm12, %v684_v49  ;;  %v694_v27 = vpack.c.bf16 %v399_v14, %v399_v14  ;;  %v695_v29 = vpack.c.bf16 %v400_v15, %v400_v15 }
  0xa3   : > { %551 = vst.msk [vmem:[%s1115_s30 + $0xc] sm:$0xf] %vm547_vm12, %v685_v51  ;;  %v696_v32 = vpack.c.bf16 %v401_v16, %v401_v16  ;;  %v697_v34 = vpack.c.bf16 %v402_v17, %v402_v17  ;;  %552 = vst.msk [vmem:[%s1115_s30 + $0x10] sm:$0xf] %vm547_vm12, %v686_v52  ;;  %v698_v37 = vpack.c.bf16 %v403_v18, %v403_v18 }
  0xa4   : > { %553 = vst.msk [vmem:[%s1115_s30 + $0x14] sm:$0xf] %vm547_vm12, %v687_v35  ;;  %554 = vst.msk [vmem:[%s1115_s30 + $0x18] sm:$0xf] %vm547_vm12, %v688_v53  ;;  %v699_v38 = vpack.c.bf16 %v404_v19, %v404_v19  ;;  %v700_v60 = vpack.c.bf16 %v405_v4, %v405_v4  ;;  %v701_v61 = vpack.c.bf16 %v406_v20, %v406_v20 }
  0xa5   : > { %555 = vst.msk [vmem:[%s1115_s30 + $0x1c] sm:$0xf] %vm547_vm12, %v689_v54  ;;  %556 = vst.msk [vmem:[%s1115_s30 + $0x20] sm:$0xf] %vm547_vm12, %v690_v55  ;;  %v702_v62 = vpack.c.bf16 %v1075_v21, %v1075_v21  ;;  %v703_v63 = vpack.c.bf16 %v1080_v22, %v1080_v22  ;;  %v704_v1 = vpack.c.bf16 %v1085_v23, %v1085_v23 }
  0xa6   : > { %557 = vst.msk [vmem:[%s1115_s30 + $0x24] sm:$0xf] %vm547_vm12, %v691_v56  ;;  %558 = vst.msk [vmem:[%s1115_s30 + $0x28] sm:$0xf] %vm547_vm12, %v692_v58  ;;  %v705_v2 = vpack.c.bf16 %v1090_v40, %v1090_v40  ;;  %v706_v3 = vpack.c.bf16 %v1095_v25, %v1095_v25  ;;  %v707_v6 = vpack.c.bf16 %v1100_v26, %v1100_v26 }
  0xa7   : > { %559 = vst.msk [vmem:[%s1115_s30 + $0x2c] sm:$0xf] %vm547_vm12, %v693_v59  ;;  %560 = vst.msk [vmem:[%s1115_s30 + $0x30] sm:$0xf] %vm547_vm12, %v694_v27  ;;  %v708_v7 = vpack.c.bf16 %v1105_v28, %v1105_v28  ;;  %v709_v8 = vpack.c.bf16 %v1110_v42, %v1110_v42  ;;  %v710_v11 = vpack.c.bf16 %v1120_v31, %v1120_v31 }
  0xa8   : > { %561 = vst.msk [vmem:[%s1115_s30 + $0x34] sm:$0xf] %vm547_vm12, %v695_v29  ;;  %562 = vst.msk [vmem:[%s1115_s30 + $0x38] sm:$0xf] %vm547_vm12, %v696_v32  ;;  %v711_v12 = vpack.c.bf16 %v1125_v44, %v1125_v44  ;;  %v712_v13 = vpack.c.bf16 %v1130_v33, %v1130_v33  ;;  %v713_v39 = vpack.c.bf16 %v1135_v46, %v1135_v46 }
  0xa9   : > { %563 = vst.msk [vmem:[%s1115_s30 + $0x3c] sm:$0xf] %vm547_vm12, %v697_v34  ;;  %564 = vst.msk [vmem:[%s1115_s30 + $0x40] sm:$0xf] %vm547_vm12, %v698_v37 }
  0xaa   : > { %565 = vst.msk [vmem:[%s1115_s30 + $0x44] sm:$0xf] %vm547_vm12, %v699_v38  ;;  %566 = vst.msk [vmem:[%s1115_s30 + $0x48] sm:$0xf] %vm547_vm12, %v700_v60 }
  0xab   : > { %567 = vst.msk [vmem:[%s1115_s30 + $0x4c] sm:$0xf] %vm547_vm12, %v701_v61  ;;  %568 = vst.msk [vmem:[%s1115_s30 + $0x50] sm:$0xf] %vm547_vm12, %v702_v62 }
  0xac   : > { %569 = vst.msk [vmem:[%s1115_s30 + $0x54] sm:$0xf] %vm547_vm12, %v703_v63  ;;  %570 = vst.msk [vmem:[%s1115_s30 + $0x58] sm:$0xf] %vm547_vm12, %v704_v1 }
  0xad   : > { %571 = vst.msk [vmem:[%s1115_s30 + $0x5c] sm:$0xf] %vm547_vm12, %v705_v2  ;;  %572 = vst.msk [vmem:[%s1115_s30 + $0x60] sm:$0xf] %vm547_vm12, %v706_v3 }
  0xae   : > { %573 = vst.msk [vmem:[%s1115_s30 + $0x64] sm:$0xf] %vm547_vm12, %v707_v6  ;;  %574 = vst.msk [vmem:[%s1115_s30 + $0x68] sm:$0xf] %vm547_vm12, %v708_v7 }
  0xaf   : > { %575 = vst.msk [vmem:[%s1115_s30 + $0x6c] sm:$0xf] %vm547_vm12, %v709_v8  ;;  %576 = vst.msk [vmem:[%s1115_s30 + $0x70] sm:$0xf] %vm547_vm12, %v710_v11 }
  0xb0   : > { %577 = vst.msk [vmem:[%s1115_s30 + $0x74] sm:$0xf] %vm547_vm12, %v711_v12  ;;  %578 = vst.msk [vmem:[%s1115_s30 + $0x78] sm:$0xf] %vm547_vm12, %v712_v13 }
  0xb1   : > { %579 = vst.msk [vmem:[%s1115_s30 + $0x7c] sm:$0xf] %vm547_vm12, %v713_v39 }
  0xb2 PF: > { %s16_s17 = sadd.s32 1, %s730_s17  }
  0xb3   : > { %p13_p4 = scmp.ge.s32.totalorder %s16_s17, 4  }
  0xb5   :  { %15 = sbr.rel (!%p13_p4) target bundleno = 3 (0x3), region = 66 }

// kernel: decoder_up_block.4
= control target key start
LH: loop header
LB: loop body
LE: loop exit
PB: predicated region body
PF: predicated region fallthrough
CT: control target
= control target key end

     0   :  { %s1325_s15 = smov 0   ;;  %s1327_s16 = smov 0   ;;  %s1539_s0 = inlined_call_operand.vmem [shape: bf16[512,128], index: 0, kind: input, shape index: {}]   ;;  %s1540_s1 = inlined_call_operand.vmem [shape: bf16[128,128], index: 1, kind: input, shape index: {}]   ;;  %s1541_s2 = inlined_call_operand.vmem [shape: f32[512,128], index: 2, kind: output, shape index: {0}]   ;;  %s1542_s3 = inlined_call_operand.vmem [shape: f32[2,1,128], index: 3, kind: output, shape index: {1}]   ;;  %s1543_s4 = inlined_call_operand.vmem [shape: f32[2,1,128], index: 4, kind: output, shape index: {2}]  }
   0x1   :  { %s1329_s17 = smov 0  }
   0x2 LB: > { %s34_s18 = sadd.s32 1, %s1294_s16  ;;  %p1108_p0 = scmp.ge.s32.totalorder %s1298_s17, 1  ;;  %s1298_s17 = sphi %s1329_s17, %s15_s17   ;;  %s1294_s16 = sphi %s1327_s16, %s1545_s16   ;;  %s1290_s15 = sphi %s1325_s15, %s1544_s15  }
   0x3   : > { %p36_p1 = scmp.ge.s32.totalorder %s34_s18, 2  ;;  %p214_p2 = scmp.lt.s32.totalorder %s1298_s17, 3 }
   0x5   : > { %s1547_s18 = smov (%p36_p1, %s34_s18), 0  ;;  %p215_p3 = pnand %p1108_p0, %p214_p2 }
   0x6   : > { %s1109_s21 = sshll.u32 (!%p215_p3), %s1290_s15, 5  ;;  %p293_p5 = scmp.lt.s32.totalorder (!%p215_p3), %s1290_s15, 1 }
   0x7   : > { %218 = sbr.rel (%p215_p3) target bundleno = 321 (0x141), region = 28  ;;  %p267_p4 = scmp.lt.s32.totalorder (!%p215_p3), %s1109_s21, 63 }
   0xc   : > { %v1252_v0 = vld [vmem:[%s1540_s1 + $0x38] sm:$0xff]   ;;  %v1253_v1 = vld [vmem:[%s1540_s1 + $0x30] sm:$0xff]   ;;  %s1549_s21 = smov (!%p267_p4, %s1109_s21), 63  ;;  %v1254_v2 = vld [vmem:[%s1540_s1 + $0x28] sm:$0xff]   ;;  %s1551_s15 = smov (!%p293_p5, %s1290_s15), 1 }
   0xd   : > { %1163 = vmatprep.subr.bf16.mxu0 %v1252_v0  ;;  %1211 = vmatprep.subr.bf16.mxu1 %v1252_v0  ;;  %s1110_s26 = sshll.u32 %s1549_s21, 2  ;;  %v1255_v3 = vld [vmem:[%s1540_s1 + $0x20] sm:$0xff]   ;;  %v1256_v5 = vld [vmem:[%s1540_s1 + $0x18] sm:$0xff]   ;;  %v1257_v6 = vld [vmem:[%s1540_s1 + $0x10] sm:$0xff]   ;;  %s1112_s14 = sshll.u32 %s1549_s21, 3 }
   0xe   : > { %1164 = vmatpush3.bf16.msra.mxu0 %v1252_v0  ;;  %1219 = vmatpush3.bf16.msra.mxu1 %v1252_v0  ;;  %s1361_s29 = scalar_lea.vmem %s1539_s0, %s1110_s26  ;;  %v1258_v8 = vld [vmem:[%s1540_s1 + $0x8] sm:$0xff]   ;;  %v1259_v9 = vld [vmem:[%s1540_s1] sm:$0xff]   ;;  %s1398_s22 = scalar_lea.vmem %s1541_s2, %s1112_s14 }
   0xf   : > { %1165 = vmatprep.subr.bf16.mxu0 %v1253_v1  ;;  %1212 = vmatprep.subr.bf16.mxu1 %v1253_v1  ;;  %v1260_v4 = vld [vmem:[%s1361_s29] sm:$0xff]   ;;  %v1261_v10 = vld [vmem:[%s1361_s29 + $0x8] sm:$0xff]   ;;  %v1262_v12 = vld [vmem:[%s1361_s29 + $0x10] sm:$0xff]   ;;  %s298_s24 = scalar_lea.vmem %s1542_s3, %s1551_s15  ;;  %s304_s27 = scalar_lea.vmem %s1543_s4, %s1551_s15 }
  0x10   : > { %1179 = vmatprep.mubr.bf16.mxu0 %v1260_v4  ;;  %v1268_v7 = vld [vmem:[%s1361_s29 + $0x40] sm:$0xff]   ;;  %v1269_v11 = vld [vmem:[%s1361_s29 + $0x48] sm:$0xff]   ;;  %v1270_v13 = vld [vmem:[%s1361_s29 + $0x50] sm:$0xff]  }
  0x11   : > { %1195 = vmatprep.mubr.bf16.mxu1 %v1268_v7  ;;  %v1263_v14 = vld [vmem:[%s1361_s29 + $0x18] sm:$0xff]   ;;  %v1264_v16 = vld [vmem:[%s1361_s29 + $0x20] sm:$0xff]   ;;  %v1265_v18 = vld [vmem:[%s1361_s29 + $0x28] sm:$0xff]  }
  0x12   : > { %1166 = vmatpush3.bf16.msra.mxu0 %v1253_v1  ;;  %1220 = vmatpush3.bf16.msra.mxu1 %v1253_v1  ;;  %v1271_v15 = vld [vmem:[%s1361_s29 + $0x58] sm:$0xff]   ;;  %v1272_v17 = vld [vmem:[%s1361_s29 + $0x60] sm:$0xff]   ;;  %v1273_v19 = vld [vmem:[%s1361_s29 + $0x68] sm:$0xff]  }
  0x13   : > { %1167 = vmatprep.subr.bf16.mxu0 %v1254_v2  ;;  %1213 = vmatprep.subr.bf16.mxu1 %v1254_v2  ;;  %v1266_v20 = vld [vmem:[%s1361_s29 + $0x30] sm:$0xff]   ;;  %v1267_v22 = vld [vmem:[%s1361_s29 + $0x38] sm:$0xff]  }
  0x14   : > { %v1274_v21 = vld [vmem:[%s1361_s29 + $0x70] sm:$0xff]   ;;  %v1275_v23 = vld [vmem:[%s1361_s29 + $0x78] sm:$0xff]  }
  0x16   : > { %1168 = vmatpush3.bf16.msra.mxu0 %v1254_v2  ;;  %1221 = vmatpush3.bf16.msra.mxu1 %v1254_v2 }
  0x17   : > { %1169 = vmatprep.subr.bf16.mxu0 %v1255_v3  ;;  %1214 = vmatprep.subr.bf16.mxu1 %v1255_v3 }
  0x1a   : > { %1170 = vmatpush3.bf16.msra.mxu0 %v1255_v3  ;;  %1222 = vmatpush3.bf16.msra.mxu1 %v1255_v3 }
  0x1b   : > { %1171 = vmatprep.subr.bf16.mxu0 %v1256_v5  ;;  %1215 = vmatprep.subr.bf16.mxu1 %v1256_v5 }
  0x1e   : > { %1172 = vmatpush3.bf16.msra.mxu0 %v1256_v5  ;;  %1223 = vmatpush3.bf16.msra.mxu1 %v1256_v5 }
  0x1f   : > { %1173 = vmatprep.subr.bf16.mxu0 %v1257_v6  ;;  %1216 = vmatprep.subr.bf16.mxu1 %v1257_v6 }
  0x22   : > { %1174 = vmatpush3.bf16.msra.mxu0 %v1257_v6  ;;  %1224 = vmatpush3.bf16.msra.mxu1 %v1257_v6 }
  0x23   : > { %1175 = vmatprep.subr.bf16.mxu0 %v1258_v8  ;;  %1217 = vmatprep.subr.bf16.mxu1 %v1258_v8 }
  0x26   : > { %1176 = vmatpush3.bf16.msra.mxu0 %v1258_v8  ;;  %1225 = vmatpush3.bf16.msra.mxu1 %v1258_v8 }
  0x27   : > { %1177 = vmatprep.subr.bf16.mxu0 %v1259_v9  ;;  %1218 = vmatprep.subr.bf16.mxu1 %v1259_v9 }
  0x2a   : > { %1178 = vmatpush3.bf16.msra.mxu0 %v1259_v9  ;;  %1226 = vmatpush3.bf16.msra.mxu1 %v1259_v9 }
  0x2d   : > { %1180 = vmatmul.mubr.bf16.vlgmr.msra.gmra.mxu0 %v1261_v10  ;;  %1196 = vmatmul.mubr.bf16.vlgmr.msra.gmra.mxu1 %v1269_v11 }
  0x2e   : > { %1183 = vmatprep.mubr.bf16.mxu0 %v1262_v12  ;;  %1199 = vmatprep.mubr.bf16.mxu1 %v1270_v13 }
  0x35   : > { %1184 = vmatmul.mubr.bf16.gmra.mxu0 %v1263_v14  ;;  %1200 = vmatmul.mubr.bf16.gmra.mxu1 %v1271_v15 }
  0x36   : > { %1187 = vmatprep.mubr.bf16.mxu0 %v1264_v16  ;;  %1203 = vmatprep.mubr.bf16.mxu1 %v1272_v17 }
  0x3d   : > { %1188 = vmatmul.mubr.bf16.gmra.mxu0 %v1265_v18  ;;  %1204 = vmatmul.mubr.bf16.gmra.mxu1 %v1273_v19 }
  0x3e   : > { %1191 = vmatprep.mubr.bf16.mxu0 %v1266_v20  ;;  %1207 = vmatprep.mubr.bf16.mxu1 %v1274_v21 }
  0x45   : > { %1192 = vmatmul.mubr.bf16.gmra.mxu0 %v1267_v22  ;;  %1208 = vmatmul.mubr.bf16.gmra.mxu1 %v1275_v23 }
  0xed   : > { %v1181_v24 = vpop.f32.mrf.mxu0  ;;  %v1400_v25 = vpop.f32.mrf.mxu1 }
  0xee   : > { %761 = vst [vmem:[%s1398_s22 + $0x10] sm:$0xff] %v1181_v24  ;;  %777 = vst [vmem:[%s1398_s22 + $0x90] sm:$0xff] %v1400_v25  ;;  %v866_v39 = vmul.f32 %v1181_v24, %v1181_v24 }
  0xef   : > { %v600_v26 = vpop.f32.mrf.mxu0  ;;  %v1402_v27 = vpop.f32.mrf.mxu1 }
  0xf0   : > { %759 = vst [vmem:[%s1398_s22] sm:$0xff] %v600_v26  ;;  %775 = vst [vmem:[%s1398_s22 + $0x80] sm:$0xff] %v1402_v27  ;;  %v864_v34 = vmul.f32 %v600_v26, %v600_v26 }
  0xf1   : > { %v1182_v28 = vpop.f32.mrf.mxu0  ;;  %v1407_v29 = vpop.f32.mrf.mxu1 }
  0xf2   : > { %762 = vst [vmem:[%s1398_s22 + $0x18] sm:$0xff] %v1182_v28  ;;  %778 = vst [vmem:[%s1398_s22 + $0x98] sm:$0xff] %v1407_v29  ;;  %v867_v44 = vmul.f32 %v1182_v28, %v1182_v28 }
  0xf3   : > { %v603_v30 = vpop.f32.mrf.mxu0  ;;  %v1412_v31 = vpop.f32.mrf.mxu1 }
  0xf4   : > { %760 = vst [vmem:[%s1398_s22 + $0x8] sm:$0xff] %v603_v30  ;;  %v826_v35 = vadd.f32 %v603_v30, %v600_v26  ;;  %v865_v36 = vmul.f32 %v603_v30, %v603_v30  ;;  %776 = vst [vmem:[%s1398_s22 + $0x88] sm:$0xff] %v1412_v31 }
  0xf5   : > { %v1185_v32 = vpop.f32.mrf.mxu0  ;;  %v1417_v33 = vpop.f32.mrf.mxu1 }
  0xf6   : > { %v827_v40 = vadd.f32 %v1181_v24, %v826_v35  ;;  %v896_v41 = vadd.f32 %v865_v36, %v864_v34  ;;  %765 = vst [vmem:[%s1398_s22 + $0x30] sm:$0xff] %v1185_v32  ;;  %781 = vst [vmem:[%s1398_s22 + $0xb0] sm:$0xff] %v1417_v33  ;;  %v870_v59 = vmul.f32 %v1185_v32, %v1185_v32 }
  0xf7   : > { %v616_v37 = vpop.f32.mrf.mxu0  ;;  %v1422_v38 = vpop.f32.mrf.mxu1 }
  0xf8   : > { %v897_v45 = vadd.f32 %v896_v41, %v866_v39  ;;  %763 = vst [vmem:[%s1398_s22 + $0x20] sm:$0xff] %v616_v37  ;;  %v828_v46 = vadd.f32 %v1182_v28, %v827_v40  ;;  %779 = vst [vmem:[%s1398_s22 + $0xa0] sm:$0xff] %v1422_v38  ;;  %v868_v50 = vmul.f32 %v616_v37, %v616_v37 }
  0xf9   : > { %v1186_v42 = vpop.f32.mrf.mxu0  ;;  %v1427_v43 = vpop.f32.mrf.mxu1 }
  0xfa   : > { %v829_v49 = vadd.f32 %v828_v46, %v616_v37  ;;  %v898_v51 = vadd.f32 %v897_v45, %v867_v44  ;;  %766 = vst [vmem:[%s1398_s22 + $0x38] sm:$0xff] %v1186_v42  ;;  %782 = vst [vmem:[%s1398_s22 + $0xb8] sm:$0xff] %v1427_v43  ;;  %v871_v0 = vmul.f32 %v1186_v42, %v1186_v42 }
  0xfb   : > { %v619_v47 = vpop.f32.mrf.mxu0  ;;  %v1432_v48 = vpop.f32.mrf.mxu1  ;;  %v880_v44 = vmul.f32 %v1402_v27, %v1402_v27 }
  0xfc   : > { %v899_v54 = vadd.f32 %v898_v51, %v868_v50  ;;  %764 = vst [vmem:[%s1398_s22 + $0x28] sm:$0xff] %v619_v47  ;;  %v830_v55 = vadd.f32 %v829_v49, %v619_v47  ;;  %v869_v56 = vmul.f32 %v619_v47, %v619_v47  ;;  %780 = vst [vmem:[%s1398_s22 + $0xa8] sm:$0xff] %v1432_v48 }
  0xfd   : > { %v1189_v52 = vpop.f32.mrf.mxu0  ;;  %v1437_v53 = vpop.f32.mrf.mxu1  ;;  %v881_v49 = vmul.f32 %v1412_v31, %v1412_v31  ;;  %v882_v51 = vmul.f32 %v1400_v25, %v1400_v25 }
  0xfe   : > { %v831_v60 = vadd.f32 %v1185_v32, %v830_v55  ;;  %v900_v61 = vadd.f32 %v899_v54, %v869_v56  ;;  %769 = vst [vmem:[%s1398_s22 + $0x50] sm:$0xff] %v1189_v52  ;;  %785 = vst [vmem:[%s1398_s22 + $0xd0] sm:$0xff] %v1437_v53  ;;  %v874_v15 = vmul.f32 %v1189_v52, %v1189_v52 }
  0xff   : > { %v632_v57 = vpop.f32.mrf.mxu0  ;;  %v1442_v58 = vpop.f32.mrf.mxu1  ;;  %v883_v55 = vmul.f32 %v1407_v29, %v1407_v29 }
 0x100   : > { %v901_v1 = vadd.f32 %v900_v61, %v870_v59  ;;  %767 = vst [vmem:[%s1398_s22 + $0x40] sm:$0xff] %v632_v57  ;;  %v832_v2 = vadd.f32 %v1186_v42, %v831_v60  ;;  %783 = vst [vmem:[%s1398_s22 + $0xc0] sm:$0xff] %v1442_v58  ;;  %v872_v6 = vmul.f32 %v632_v57, %v632_v57 }
 0x101   : > { %v1190_v62 = vpop.f32.mrf.mxu0  ;;  %v1447_v63 = vpop.f32.mrf.mxu1  ;;  %v884_v59 = vmul.f32 %v1422_v38, %v1422_v38 }
 0x102   : > { %v833_v5 = vadd.f32 %v832_v2, %v632_v57  ;;  %v902_v7 = vadd.f32 %v901_v1, %v871_v0  ;;  %770 = vst [vmem:[%s1398_s22 + $0x58] sm:$0xff] %v1190_v62  ;;  %786 = vst [vmem:[%s1398_s22 + $0xd8] sm:$0xff] %v1447_v63  ;;  %v875_v20 = vmul.f32 %v1190_v62, %v1190_v62 }
 0x103   : > { %v635_v3 = vpop.f32.mrf.mxu0  ;;  %v1452_v4 = vpop.f32.mrf.mxu1 }
 0x104   : > { %v903_v10 = vadd.f32 %v902_v7, %v872_v6  ;;  %768 = vst [vmem:[%s1398_s22 + $0x48] sm:$0xff] %v635_v3  ;;  %v834_v11 = vadd.f32 %v833_v5, %v635_v3  ;;  %v873_v12 = vmul.f32 %v635_v3, %v635_v3  ;;  %784 = vst [vmem:[%s1398_s22 + $0xc8] sm:$0xff] %v1452_v4 }
 0x105   : > { %v1193_v8 = vpop.f32.mrf.mxu0  ;;  %v1457_v9 = vpop.f32.mrf.mxu1  ;;  %v888_v5 = vmul.f32 %v1442_v58, %v1442_v58 }
 0x106   : > { %v835_v16 = vadd.f32 %v1189_v52, %v834_v11  ;;  %v904_v17 = vadd.f32 %v903_v10, %v873_v12  ;;  %773 = vst [vmem:[%s1398_s22 + $0x70] sm:$0xff] %v1193_v8  ;;  %789 = vst [vmem:[%s1398_s22 + $0xf0] sm:$0xff] %v1457_v9  ;;  %v878_v36 = vmul.f32 %v1193_v8, %v1193_v8 }
 0x107   : > { %v648_v13 = vpop.f32.mrf.mxu0  ;;  %v1462_v14 = vpop.f32.mrf.mxu1 }
 0x108   : > { %v905_v21 = vadd.f32 %v904_v17, %v874_v15  ;;  %771 = vst [vmem:[%s1398_s22 + $0x60] sm:$0xff] %v648_v13  ;;  %v836_v22 = vadd.f32 %v1190_v62, %v835_v16  ;;  %787 = vst [vmem:[%s1398_s22 + $0xe0] sm:$0xff] %v1462_v14  ;;  %v876_v28 = vmul.f32 %v648_v13, %v648_v13 }
 0x109   : > { %v1194_v18 = vpop.f32.mrf.mxu0  ;;  %v1467_v19 = vpop.f32.mrf.mxu1  ;;  %v885_v62 = vmul.f32 %v1432_v48, %v1432_v48  ;;  %v892_v15 = vmul.f32 %v1462_v14, %v1462_v14 }
 0x10a   : > { %v837_v26 = vadd.f32 %v836_v22, %v648_v13  ;;  %v906_v30 = vadd.f32 %v905_v21, %v875_v20  ;;  %774 = vst [vmem:[%s1398_s22 + $0x78] sm:$0xff] %v1194_v18  ;;  %790 = vst [vmem:[%s1398_s22 + $0xf8] sm:$0xff] %v1467_v19  ;;  %v879_v40 = vmul.f32 %v1194_v18, %v1194_v18 }
 0x10b   : > { %v651_v23 = vpop.f32.mrf.mxu0  ;;  %v715_v24 = vpop.f32.mrf.mxu1  ;;  %v895_v22 = vmul.f32 %v1467_v19, %v1467_v19 }
 0x10c   : > { %v907_v32 = vadd.f32 %v906_v30, %v876_v28  ;;  %772 = vst [vmem:[%s1398_s22 + $0x68] sm:$0xff] %v651_v23  ;;  %v838_v34 = vadd.f32 %v837_v26, %v651_v23  ;;  %v877_v35 = vmul.f32 %v651_v23, %v651_v23  ;;  %788 = vst [vmem:[%s1398_s22 + $0xe8] sm:$0xff] %v715_v24 }
 0x10e   : > { %v839_v37 = vadd.f32 %v1193_v8, %v838_v34  ;;  %v908_v39 = vadd.f32 %v907_v32, %v877_v35  ;;  %v889_v8 = vmul.f32 %v1452_v4, %v1452_v4 }
 0x110   : > { %v909_v41 = vadd.f32 %v908_v39, %v878_v36  ;;  %v840_v42 = vadd.f32 %v1194_v18, %v839_v37  ;;  %v893_v18 = vmul.f32 %v715_v24, %v715_v24 }
 0x112   : > { %v841_v45 = vadd.f32 %v840_v42, %v1402_v27  ;;  %v910_v46 = vadd.f32 %v909_v41, %v879_v40 }
 0x114   : > { %v842_v47 = vadd.f32 %v841_v45, %v1412_v31  ;;  %v911_v50 = vadd.f32 %v910_v46, %v880_v44 }
 0x116   : > { %v843_v52 = vadd.f32 %v1400_v25, %v842_v47  ;;  %v912_v54 = vadd.f32 %v911_v50, %v881_v49  ;;  %v886_v25 = vmul.f32 %v1417_v33, %v1417_v33 }
 0x118   : > { %v913_v56 = vadd.f32 %v912_v54, %v882_v51  ;;  %v844_v57 = vadd.f32 %v1407_v29, %v843_v52  ;;  %v887_v29 = vmul.f32 %v1427_v43, %v1427_v43 }
 0x11a   : > { %v845_v27 = vadd.f32 %v844_v57, %v1422_v38  ;;  %v914_v60 = vadd.f32 %v913_v56, %v883_v55 }
 0x11c   : > { %v915_v31 = vadd.f32 %v914_v60, %v884_v59  ;;  %v846_v61 = vadd.f32 %v845_v27, %v1432_v48 }
 0x11e   : > { %v847_v0 = vadd.f32 %v1417_v33, %v846_v61  ;;  %v916_v1 = vadd.f32 %v915_v31, %v885_v62  ;;  %v890_v33 = vmul.f32 %v1437_v53, %v1437_v53 }
 0x120   : > { %v917_v2 = vadd.f32 %v916_v1, %v886_v25  ;;  %v848_v3 = vadd.f32 %v1427_v43, %v847_v0  ;;  %v891_v43 = vmul.f32 %v1447_v63, %v1447_v63 }
 0x122   : > { %v849_v38 = vadd.f32 %v848_v3, %v1442_v58  ;;  %v918_v6 = vadd.f32 %v917_v2, %v887_v29 }
 0x124   : > { %v919_v7 = vadd.f32 %v918_v6, %v888_v5  ;;  %v850_v48 = vadd.f32 %v849_v38, %v1452_v4 }
 0x126   : > { %v851_v10 = vadd.f32 %v1437_v53, %v850_v48  ;;  %v920_v11 = vadd.f32 %v919_v7, %v889_v8  ;;  %v894_v53 = vmul.f32 %v1457_v9, %v1457_v9 }
 0x128   : > { %v921_v12 = vadd.f32 %v920_v11, %v890_v33  ;;  %v852_v58 = vadd.f32 %v1447_v63, %v851_v10 }
 0x12a   : > { %v853_v13 = vadd.f32 %v852_v58, %v1462_v14  ;;  %v922_v16 = vadd.f32 %v921_v12, %v891_v43 }
 0x12c   : > { %v923_v4 = vadd.f32 %v922_v16, %v892_v15  ;;  %v854_v17 = vadd.f32 %v853_v13, %v715_v24 }
 0x12e   : > { %v855_v20 = vadd.f32 %v1457_v9, %v854_v17  ;;  %v924_v21 = vadd.f32 %v923_v4, %v893_v18 }
 0x130   : > { %v856_v63 = vadd.f32 %v1467_v19, %v855_v20  ;;  %v925_v23 = vadd.f32 %v924_v21, %v894_v53 }
 0x132   : > { %v857_v26 = vrot.slane %v856_v63, 4  ;;  %v926_v28 = vadd.f32 %v925_v23, %v895_v22 }
 0x134   : > { %v858_v14 = vadd.f32 %v857_v26, %v856_v63  ;;  %v927_v30 = vrot.slane %v926_v28, 4 }
 0x136   : > { %v859_v32 = vrot.slane %v858_v14, 2  ;;  %v928_v34 = vadd.f32 %v927_v30, %v926_v28 }
 0x138   : > { %v860_v24 = vadd.f32 %v859_v32, %v858_v14  ;;  %v929_v35 = vrot.slane %v928_v34, 2 }
 0x13a   : > { %v861_v36 = vrot.slane %v860_v24, 1  ;;  %v930_v37 = vadd.f32 %v929_v35, %v928_v34 }
 0x13c   : > { %v862_v9 = vadd.f32 %v861_v36, %v860_v24  ;;  %v931_v39 = vrot.slane %v930_v37, 1 }
 0x13e   : > { %863 = vst [vmem:[%s298_s24] sm:$0x1] %v862_v9  ;;  %v932_v19 = vadd.f32 %v931_v39, %v930_v37 }
 0x140   : > { %933 = vst [vmem:[%s304_s27] sm:$0x1] %v932_v19 }
 0x141 PF: > { %s15_s17 = sadd.s32 1, %s1298_s17   ;;  %s1544_s15 = smov %s1294_s16 }
 0x142   : > { %p12_p6 = scmp.ge.s32.totalorder %s15_s17, 4   ;;  %s1545_s16 = smov %s1547_s18 }
 0x144   :  { %14 = sbr.rel (!%p12_p6) target bundleno = 2 (0x2), region = 93 }

// kernel: tile.13
= control target key start
LH: loop header
LB: loop body
LE: loop exit
PB: predicated region body
PF: predicated region fallthrough
CT: control target
= control target key end

     0   :  { %s22_s0 = inlined_call_operand.vmem [shape: f32[4], index: 0, kind: input, shape index: {}]   ;;  %s23_s1 = inlined_call_operand.vmem [shape: f32[4,4], index: 1, kind: output, shape index: {}]  }
   0x1   :  { %v4_v0 = vld [vmem:[%s22_s0] ss:$0 sm:$0xff] }
   0x2   :  { %5 = vst [vmem:[%s23_s1] sm:$0xf] %v4_v0 }

// kernel: tile.18
= control target key start
LH: loop header
LB: loop body
LE: loop exit
PB: predicated region body
PF: predicated region fallthrough
CT: control target
= control target key end

     0   :  { %vm8_vm0 = vcmask 31744   ;;  %s40_s8 = smov 4   ;;  %s41_s9 = smov 8   ;;  %vm14_vm1 = vcmask 130144   ;;  %vm20_vm2 = vcmask 97344   ;;  %vm26_vm3 = vcmask 64544   ;;  %s58_s0 = inlined_call_operand.vmem [shape: f32[4,4], index: 0, kind: input, shape index: {}]   ;;  %s59_s1 = inlined_call_operand.vmem [shape: f32[1,16], index: 1, kind: output, shape index: {}]  }
   0x1   :  { %v5_v0 = vld [vmem:[%s58_s0] sm:$0xf]  ;;  %s39_s0 = smov 12  }
   0x2   :  { %6 = vst [vmem:[#allocation1] sm:$0xf] %v5_v0 }
   0x9   :  { %v11_v1 = vld [vmem:[#allocation1 + $0x3] sm:$0x1]   ;;  %v23_v2 = vld [vmem:[#allocation1 + $0x1] sm:$0x1]   ;;  %v7_v3 = vld [vmem:[#allocation1] sm:$0x1]  }
   0xa   :  { %12 = vrot.lane.b32.xlu0 %v11_v1, %s39_s0  ;;  %24 = vrot.lane.b32.xlu1 %v23_v2, %s40_s8  ;;  %v17_v4 = vld [vmem:[#allocation1 + $0x2] sm:$0x1]   ;;  %9 = vst.msk [vmem:[#allocation0] sm:$0x1] %vm8_vm0, %v7_v3  }
   0xe   :  { %18 = vrot.lane.b32.xlu0 %v17_v4, %s41_s9 }
  0x7c   :  { %v13_v5 = vpop.permute.xlu0 %12   ;;  %v25_v6 = vpop.permute.xlu1 %24  }
  0x7d   :  { %15 = vst.msk [vmem:[#allocation0] sm:$0x1] %vm14_vm1, %v13_v5  }
  0x80   :  { %v19_v7 = vpop.permute.xlu0 %18  }
  0x81   :  { %21 = vst.msk [vmem:[#allocation0] sm:$0x1] %vm20_vm2, %v19_v7  }
  0x82   :  { %27 = vst.msk [vmem:[#allocation0] sm:$0x1] %vm26_vm3, %v25_v6  }
  0x89   :  { %v32_v8 = vld [vmem:[#allocation0] sm:$0x1] }
  0x8a   :  { %35 = vst [vmem:[%s59_s1] sm:$0x1] %v32_v8 }

// kernel: decoder_up_block.7
= control target key start
LH: loop header
LB: loop body
LE: loop exit
PB: predicated region body
PF: predicated region fallthrough
CT: control target
= control target key end

     0   :  { %s569_s17 = smov 0   ;;  %s991_s0 = inlined_call_operand.vmem [shape: f32[512,16], index: 0, kind: input, shape index: {}]   ;;  %s992_s1 = inlined_call_operand.vmem [shape: f32[1,16], index: 1, kind: input, shape index: {}]   ;;  %s993_s2 = inlined_call_operand.vmem [shape: f32[1,16], index: 2, kind: input, shape index: {}]   ;;  %s994_s3 = inlined_call_operand.<no memory space> [shape: f32[1,1], index: 3, kind: input, shape index: {}]   ;;  %s995_s4 = inlined_call_operand.vmem [shape: f32[512,16], index: 4, kind: output, shape index: {}]  }
   0x1   :  { %v9_v0 = vstv %s994_s3 }
   0x2   :  { %10 = vst [vmem:[#allocation2] sm:$0x1] %v9_v0 }
   0x3 LB: > { %s508_s18 = sadd.s32 4294967295, %s538_s17   ;;  %p512_p0 = scmp.ge.s32.totalorder %s538_s17, 1  ;;  %s538_s17 = sphi %s569_s17, %s16_s17  }
   0x4   : > { %p165_p1 = scmp.lt.s32.totalorder %s538_s17, 3 }
   0x6   : > { %p166_p2 = pnand %p512_p0, %p165_p1 }
   0x8   : > { %169 = sbr.rel (%p166_p2) target bundleno = 164 (0xa4), region = 36 }
   0xd   : > { %v519_v1 = vld [vmem:[#allocation2] ss:$0 sm:$0xff]  ;;  %v540_v2 = vmov 0   ;;  %s513_s3 = sshll.u32 %s508_s18, 5  ;;  %vm419_vm12 = vcmask 130048  }
   0xe   : > { %531 = vset.pattern.permute.xlu0 %v540_v2  ;;  %p192_p3 = scmp.lt.s32.totalorder %s513_s3, 63  ;;  %v591_v4 = vld [vmem:[%s992_s1] ss:$0 sm:$0xff] }
   0xf   : > { %352 = vperm.xlu0 %531, %v519_v1   ;;  %v600_v9 = vld [vmem:[%s993_s2] ss:$0 sm:$0xff] }
  0x10   : > { %s1034_s3 = smov (!%p192_p3, %s513_s3), 63 }
  0x11   : > { %s514_s19 = sshll.u32 %s1034_s3, 3 }
  0x12   : > { %s585_s22 = scalar_lea.vmem %s991_s0, %s514_s19  ;;  %s818_s29 = scalar_lea.vmem %s995_s4, %s514_s19 }
  0x13   : > { %v203_v3 = vld [vmem:[%s585_s22] sm:$0xff]  ;;  %v204_v5 = vld [vmem:[%s585_s22 + $0x8] sm:$0xff]  ;;  %v205_v6 = vld [vmem:[%s585_s22 + $0x10] sm:$0xff] }
  0x14   : > { %v206_v7 = vld [vmem:[%s585_s22 + $0x18] sm:$0xff]  ;;  %v207_v8 = vld [vmem:[%s585_s22 + $0x20] sm:$0xff]  ;;  %v208_v10 = vld [vmem:[%s585_s22 + $0x28] sm:$0xff]  ;;  %v242_v13 = vmul.f32 %v591_v4, %v203_v3  ;;  %v243_v17 = vmul.f32 %v591_v4, %v204_v5  ;;  %v244_v21 = vmul.f32 %v591_v4, %v205_v6 }
  0x15   : > { %v209_v11 = vld [vmem:[%s585_s22 + $0x30] sm:$0xff]  ;;  %v210_v12 = vld [vmem:[%s585_s22 + $0x38] sm:$0xff]  ;;  %v211_v14 = vld [vmem:[%s585_s22 + $0x40] sm:$0xff]  ;;  %v245_v22 = vmul.f32 %v591_v4, %v206_v7  ;;  %v246_v26 = vmul.f32 %v591_v4, %v207_v8  ;;  %v247_v27 = vmul.f32 %v591_v4, %v208_v10 }
  0x16   : > { %v212_v15 = vld [vmem:[%s585_s22 + $0x48] sm:$0xff]  ;;  %v213_v16 = vld [vmem:[%s585_s22 + $0x50] sm:$0xff]  ;;  %v214_v18 = vld [vmem:[%s585_s22 + $0x58] sm:$0xff]  ;;  %v248_v28 = vmul.f32 %v591_v4, %v209_v11  ;;  %v249_v29 = vmul.f32 %v591_v4, %v210_v12  ;;  %v250_v33 = vmul.f32 %v591_v4, %v211_v14  ;;  %v629_v36 = vadd.f32 %v600_v9, %v242_v13 }
  0x17   : > { %v215_v19 = vld [vmem:[%s585_s22 + $0x60] sm:$0xff]  ;;  %v216_v20 = vld [vmem:[%s585_s22 + $0x68] sm:$0xff]  ;;  %v217_v23 = vld [vmem:[%s585_s22 + $0x70] sm:$0xff]  ;;  %v251_v34 = vmul.f32 %v591_v4, %v212_v15  ;;  %v252_v35 = vmul.f32 %v591_v4, %v213_v16  ;;  %v253_v40 = vmul.f32 %v591_v4, %v214_v18  ;;  %v638_v43 = vadd.f32 %v600_v9, %v243_v17 }
  0x18   : > { %v218_v24 = vld [vmem:[%s585_s22 + $0x78] sm:$0xff]  ;;  %v219_v25 = vld [vmem:[%s585_s22 + $0x80] sm:$0xff]  ;;  %v220_v30 = vld [vmem:[%s585_s22 + $0x88] sm:$0xff]  ;;  %v254_v41 = vmul.f32 %v591_v4, %v215_v19  ;;  %v255_v42 = vmul.f32 %v591_v4, %v216_v20  ;;  %v256_v47 = vmul.f32 %v591_v4, %v217_v23  ;;  %v647_v50 = vadd.f32 %v600_v9, %v244_v21 }
  0x19   : > { %v221_v31 = vld [vmem:[%s585_s22 + $0x90] sm:$0xff]  ;;  %v222_v32 = vld [vmem:[%s585_s22 + $0x98] sm:$0xff]  ;;  %v223_v37 = vld [vmem:[%s585_s22 + $0xa0] sm:$0xff]  ;;  %v257_v48 = vmul.f32 %v591_v4, %v218_v24  ;;  %v258_v49 = vmul.f32 %v591_v4, %v219_v25  ;;  %v259_v54 = vmul.f32 %v591_v4, %v220_v30  ;;  %v656_v57 = vadd.f32 %v600_v9, %v245_v22 }
  0x1a   : > { %v224_v38 = vld [vmem:[%s585_s22 + $0xa8] sm:$0xff]  ;;  %v225_v39 = vld [vmem:[%s585_s22 + $0xb0] sm:$0xff]  ;;  %v226_v44 = vld [vmem:[%s585_s22 + $0xb8] sm:$0xff]  ;;  %v260_v55 = vmul.f32 %v591_v4, %v221_v31  ;;  %v261_v56 = vmul.f32 %v591_v4, %v222_v32  ;;  %v262_v61 = vmul.f32 %v591_v4, %v223_v37  ;;  %v665_v0 = vadd.f32 %v600_v9, %v246_v26 }
  0x1b   : > { %v227_v45 = vld [vmem:[%s585_s22 + $0xc0] sm:$0xff]  ;;  %v228_v46 = vld [vmem:[%s585_s22 + $0xc8] sm:$0xff]  ;;  %v229_v51 = vld [vmem:[%s585_s22 + $0xd0] sm:$0xff]  ;;  %v263_v62 = vmul.f32 %v591_v4, %v224_v38  ;;  %v264_v63 = vmul.f32 %v591_v4, %v225_v39  ;;  %v265_v1 = vmul.f32 %v591_v4, %v226_v44  ;;  %v671_v5 = vadd.f32 %v600_v9, %v247_v27 }
  0x1c   : > { %v230_v52 = vld [vmem:[%s585_s22 + $0xd8] sm:$0xff]  ;;  %v231_v53 = vld [vmem:[%s585_s22 + $0xe0] sm:$0xff]  ;;  %v232_v58 = vld [vmem:[%s585_s22 + $0xe8] sm:$0xff]  ;;  %v266_v2 = vmul.f32 %v591_v4, %v227_v45  ;;  %v267_v3 = vmul.f32 %v591_v4, %v228_v46  ;;  %v268_v6 = vmul.f32 %v591_v4, %v229_v51  ;;  %v677_v10 = vadd.f32 %v600_v9, %v248_v28 }
  0x1d   : > { %v233_v59 = vld [vmem:[%s585_s22 + $0xf0] sm:$0xff]  ;;  %v234_v60 = vld [vmem:[%s585_s22 + $0xf8] sm:$0xff]  ;;  %v269_v7 = vmul.f32 %v591_v4, %v230_v52  ;;  %v270_v8 = vmul.f32 %v591_v4, %v231_v53  ;;  %v271_v11 = vmul.f32 %v591_v4, %v232_v58  ;;  %v683_v14 = vadd.f32 %v600_v9, %v249_v29 }
  0x1e   : > { %v272_v12 = vmul.f32 %v591_v4, %v233_v59  ;;  %v273_v13 = vmul.f32 %v591_v4, %v234_v60  ;;  %v686_v15 = vadd.f32 %v600_v9, %v250_v33  ;;  %v689_v16 = vadd.f32 %v600_v9, %v251_v34 }
  0x1f   : > { %v692_v17 = vadd.f32 %v600_v9, %v252_v35  ;;  %v695_v18 = vadd.f32 %v600_v9, %v253_v40  ;;  %v698_v19 = vadd.f32 %v600_v9, %v254_v41  ;;  %v701_v4 = vadd.f32 %v600_v9, %v255_v42 }
  0x20   : > { %v704_v20 = vadd.f32 %v600_v9, %v256_v47  ;;  %v707_v21 = vadd.f32 %v600_v9, %v257_v48  ;;  %v710_v22 = vadd.f32 %v600_v9, %v258_v49  ;;  %v713_v23 = vadd.f32 %v600_v9, %v259_v54 }
  0x21   : > { %v716_v24 = vadd.f32 %v600_v9, %v260_v55  ;;  %v719_v25 = vadd.f32 %v600_v9, %v261_v56  ;;  %v722_v26 = vadd.f32 %v600_v9, %v262_v61  ;;  %v725_v27 = vadd.f32 %v600_v9, %v263_v62 }
  0x22   : > { %v728_v28 = vadd.f32 %v600_v9, %v264_v63  ;;  %v731_v29 = vadd.f32 %v600_v9, %v265_v1  ;;  %v734_v30 = vadd.f32 %v600_v9, %v266_v2  ;;  %v737_v31 = vadd.f32 %v600_v9, %v267_v3 }
  0x23   : > { %v740_v32 = vadd.f32 %v600_v9, %v268_v6  ;;  %v743_v33 = vadd.f32 %v600_v9, %v269_v7  ;;  %v746_v34 = vadd.f32 %v600_v9, %v270_v8  ;;  %v749_v35 = vadd.f32 %v600_v9, %v271_v11 }
  0x24   : > { %1006 = vst [vmem:[#allocation3_spill] sm:$0xff] %v731_v29  ;;  %1007 = vst [vmem:[#allocation4_spill] sm:$0xff] %v734_v30  ;;  %v752_v37 = vadd.f32 %v600_v9, %v272_v12  ;;  %v755_v38 = vadd.f32 %v600_v9, %v273_v13  ;;  %vm313_vm0 = vcmp.ge.f32.partialorder %v629_v36, 0.0  ;;  %vm314_vm1 = vcmp.ge.f32.partialorder %v638_v43, 0.0 }
  0x25   : > { %1008 = vst [vmem:[#allocation5_spill] sm:$0xff] %v740_v32  ;;  %1009 = vst [vmem:[#allocation6_spill] sm:$0xff] %v746_v34  ;;  %vm315_vm2 = vcmp.ge.f32.partialorder %v647_v50, 0.0  ;;  %vm316_vm3 = vcmp.ge.f32.partialorder %v656_v57, 0.0  ;;  %vm317_vm4 = vcmp.ge.f32.partialorder %v665_v0, 0.0  ;;  %vm318_vm5 = vcmp.ge.f32.partialorder %v671_v5, 0.0 }
  0x26   : > { %1010 = vst [vmem:[#allocation7_spill] sm:$0xff] %v752_v37  ;;  %vm320_vm7 = vcmp.ge.f32.partialorder %v683_v14, 0.0  ;;  %vm321_vm8 = vcmp.ge.f32.partialorder %v686_v15, 0.0  ;;  %vm322_vm9 = vcmp.ge.f32.partialorder %v689_v16, 0.0  ;;  %vm339_vm6 = vcmp.ge.f32.partialorder %v740_v32, 0.0 }
  0x27   : > { %vm340_vm15 = vcmp.ge.f32.partialorder %v743_v33, 0.0  ;;  %vm341_vm11 = vcmp.ge.f32.partialorder %v746_v34, 0.0  ;;  %vm342_vm10 = vcmp.ge.f32.partialorder %v749_v35, 0.0  ;;  %vm343_vm14 = vcmp.ge.f32.partialorder %v752_v37, 0.0 }
  0x28   : > { %vm344_vm13 = vcmp.ge.f32.partialorder %v755_v38, 0.0 }
  0x8a   : > { %v353_v39 = vpop.permute.xlu0 %352 }
  0x8b   : > { %v355_v9 = vmul.f32 %v353_v39, %v629_v36  ;;  %v356_v40 = vmul.f32 %v353_v39, %v638_v43  ;;  %v357_v41 = vmul.f32 %v353_v39, %v647_v50  ;;  %v358_v42 = vmul.f32 %v353_v39, %v656_v57 }
  0x8c   : > { %v359_v44 = vmul.f32 %v353_v39, %v665_v0  ;;  %v360_v45 = vmul.f32 %v353_v39, %v671_v5  ;;  %v361_v46 = vmul.f32 %v353_v39, %v677_v10  ;;  %v362_v47 = vmul.f32 %v353_v39, %v683_v14 }
  0x8d   : > { %v363_v48 = vmul.f32 %v353_v39, %v686_v15  ;;  %v364_v49 = vmul.f32 %v353_v39, %v689_v16  ;;  %v365_v51 = vmul.f32 %v353_v39, %v692_v17  ;;  %v366_v52 = vmul.f32 %v353_v39, %v695_v18 }
  0x8e   : > { %v367_v53 = vmul.f32 %v353_v39, %v698_v19  ;;  %v368_v54 = vmul.f32 %v353_v39, %v701_v4  ;;  %v369_v55 = vmul.f32 %v353_v39, %v704_v20  ;;  %v370_v56 = vmul.f32 %v353_v39, %v707_v21 }
  0x8f   : > { %v371_v58 = vmul.f32 %v353_v39, %v710_v22  ;;  %v372_v59 = vmul.f32 %v353_v39, %v713_v23  ;;  %v373_v60 = vmul.f32 %v353_v39, %v716_v24  ;;  %v374_v61 = vmul.f32 %v353_v39, %v719_v25 }
  0x90   : > { %v375_v62 = vmul.f32 %v353_v39, %v722_v26  ;;  %v376_v63 = vmul.f32 %v353_v39, %v725_v27  ;;  %v377_v1 = vmul.f32 %v353_v39, %v728_v28  ;;  %v378_v2 = vmul.f32 %v353_v39, %v731_v29 }
  0x91   : > { %v379_v3 = vmul.f32 %v353_v39, %v734_v30  ;;  %v380_v6 = vmul.f32 %v353_v39, %v737_v31  ;;  %v381_v7 = vmul.f32 %v353_v39, %v740_v32  ;;  %v382_v8 = vmul.f32 %v353_v39, %v743_v33 }
  0x92   : > { %v383_v11 = vmul.f32 %v353_v39, %v746_v34  ;;  %v384_v12 = vmul.f32 %v353_v39, %v749_v35  ;;  %v385_v13 = vmul.f32 %v353_v39, %v752_v37  ;;  %v386_v29 = vmul.f32 %v353_v39, %v755_v38 }
  0x93   : > { %v387_v30 = vsel %vm313_vm0, %v629_v36, %v355_v9  ;;  %v388_v32 = vsel %vm314_vm1, %v638_v43, %v356_v40  ;;  %v389_v34 = vsel %vm315_vm2, %v647_v50, %v357_v41  ;;  %v390_v37 = vsel %vm316_vm3, %v656_v57, %v358_v42  ;;  %v1032_v40 = vld [vmem:[#allocation7_spill] sm:$0xff] }
  0x94   : > { %v391_v36 = vsel %vm317_vm4, %v665_v0, %v359_v44  ;;  %v392_v39 = vsel %vm318_vm5, %v671_v5, %v360_v45  ;;  %vm1011_vm0 = vcmp.ge.f32.partialorder %v677_v10, 0.0  ;;  %v394_v50 = vsel %vm320_vm7, %v683_v14, %v362_v47  ;;  %420 = vst.msk [vmem:[%s818_s29] sm:$0xff] %vm419_vm12, %v387_v30  ;;  %421 = vst.msk [vmem:[%s818_s29 + $0x8] sm:$0xff] %vm419_vm12, %v388_v32  ;;  %v1030_v30 = vld [vmem:[#allocation5_spill] sm:$0xff] }
  0x95   : > { %v393_v43 = vsel %vm1011_vm0, %v677_v10, %v361_v46  ;;  %422 = vst.msk [vmem:[%s818_s29 + $0x10] sm:$0xff] %vm419_vm12, %v389_v34  ;;  %423 = vst.msk [vmem:[%s818_s29 + $0x18] sm:$0xff] %vm419_vm12, %v390_v37  ;;  %v395_v57 = vsel %vm321_vm8, %v686_v15, %v363_v48  ;;  %v396_v0 = vsel %vm322_vm9, %v689_v16, %v364_v49  ;;  %vm1012_vm1 = vcmp.ge.f32.partialorder %v692_v17, 0.0 }
  0x96   : > { %v397_v5 = vsel %vm1012_vm1, %v692_v17, %v365_v51  ;;  %vm1013_vm2 = vcmp.ge.f32.partialorder %v695_v18, 0.0  ;;  %424 = vst.msk [vmem:[%s818_s29 + $0x20] sm:$0xff] %vm419_vm12, %v391_v36  ;;  %425 = vst.msk [vmem:[%s818_s29 + $0x28] sm:$0xff] %vm419_vm12, %v392_v39  ;;  %vm1014_vm3 = vcmp.ge.f32.partialorder %v698_v19, 0.0  ;;  %vm1015_vm4 = vcmp.ge.f32.partialorder %v701_v4, 0.0 }
  0x97   : > { %v398_v10 = vsel %vm1013_vm2, %v695_v18, %v366_v52  ;;  %426 = vst.msk [vmem:[%s818_s29 + $0x30] sm:$0xff] %vm419_vm12, %v393_v43  ;;  %427 = vst.msk [vmem:[%s818_s29 + $0x38] sm:$0xff] %vm419_vm12, %v394_v50  ;;  %v399_v14 = vsel %vm1014_vm3, %v698_v19, %v367_v53  ;;  %v400_v15 = vsel %vm1015_vm4, %v701_v4, %v368_v54  ;;  %vm1016_vm5 = vcmp.ge.f32.partialorder %v704_v20, 0.0 }
  0x98   : > { %v401_v16 = vsel %vm1016_vm5, %v704_v20, %v369_v55  ;;  %vm1017_vm7 = vcmp.ge.f32.partialorder %v707_v21, 0.0  ;;  %428 = vst.msk [vmem:[%s818_s29 + $0x40] sm:$0xff] %vm419_vm12, %v395_v57  ;;  %429 = vst.msk [vmem:[%s818_s29 + $0x48] sm:$0xff] %vm419_vm12, %v396_v0  ;;  %vm1018_vm8 = vcmp.ge.f32.partialorder %v710_v22, 0.0  ;;  %vm1019_vm9 = vcmp.ge.f32.partialorder %v713_v23, 0.0 }
  0x99   : > { %v402_v17 = vsel %vm1017_vm7, %v707_v21, %v370_v56  ;;  %430 = vst.msk [vmem:[%s818_s29 + $0x50] sm:$0xff] %vm419_vm12, %v397_v5  ;;  %431 = vst.msk [vmem:[%s818_s29 + $0x58] sm:$0xff] %vm419_vm12, %v398_v10  ;;  %v403_v18 = vsel %vm1018_vm8, %v710_v22, %v371_v58  ;;  %v404_v19 = vsel %vm1019_vm9, %v713_v23, %v372_v59  ;;  %vm1020_vm0 = vcmp.ge.f32.partialorder %v716_v24, 0.0 }
  0x9a   : > { %v405_v4 = vsel %vm1020_vm0, %v716_v24, %v373_v60  ;;  %vm1021_vm1 = vcmp.ge.f32.partialorder %v719_v25, 0.0  ;;  %432 = vst.msk [vmem:[%s818_s29 + $0x60] sm:$0xff] %vm419_vm12, %v399_v14  ;;  %433 = vst.msk [vmem:[%s818_s29 + $0x68] sm:$0xff] %vm419_vm12, %v400_v15  ;;  %vm1022_vm2 = vcmp.ge.f32.partialorder %v722_v26, 0.0  ;;  %vm1023_vm3 = vcmp.ge.f32.partialorder %v725_v27, 0.0  ;;  %v1025_v24 = vld [vmem:[#allocation3_spill] sm:$0xff] }
  0x9b   : > { %v406_v20 = vsel %vm1021_vm1, %v719_v25, %v374_v61  ;;  %434 = vst.msk [vmem:[%s818_s29 + $0x70] sm:$0xff] %vm419_vm12, %v401_v16  ;;  %435 = vst.msk [vmem:[%s818_s29 + $0x78] sm:$0xff] %vm419_vm12, %v402_v17  ;;  %v407_v21 = vsel %vm1022_vm2, %v722_v26, %v375_v62  ;;  %v408_v22 = vsel %vm1023_vm3, %v725_v27, %v376_v63  ;;  %vm1024_vm4 = vcmp.ge.f32.partialorder %v728_v28, 0.0  ;;  %v1027_v26 = vld [vmem:[#allocation4_spill] sm:$0xff] }
  0x9c   : > { %v409_v23 = vsel %vm1024_vm4, %v728_v28, %v377_v1  ;;  %vm1026_vm5 = vcmp.ge.f32.partialorder %v1025_v24, 0.0  ;;  %436 = vst.msk [vmem:[%s818_s29 + $0x80] sm:$0xff] %vm419_vm12, %v403_v18  ;;  %437 = vst.msk [vmem:[%s818_s29 + $0x88] sm:$0xff] %vm419_vm12, %v404_v19  ;;  %vm1028_vm7 = vcmp.ge.f32.partialorder %v1027_v26, 0.0  ;;  %vm1029_vm8 = vcmp.ge.f32.partialorder %v737_v31, 0.0 }
  0x9d   : > { %v410_v25 = vsel %vm1026_vm5, %v1025_v24, %v378_v2  ;;  %438 = vst.msk [vmem:[%s818_s29 + $0x90] sm:$0xff] %vm419_vm12, %v405_v4  ;;  %439 = vst.msk [vmem:[%s818_s29 + $0x98] sm:$0xff] %vm419_vm12, %v406_v20  ;;  %v411_v27 = vsel %vm1028_vm7, %v1027_v26, %v379_v3  ;;  %v412_v28 = vsel %vm1029_vm8, %v737_v31, %v380_v6  ;;  %v1031_v31 = vld [vmem:[#allocation6_spill] sm:$0xff] }
  0x9e   : > { %v413_v32 = vsel %vm339_vm6, %v1030_v30, %v381_v7  ;;  %v414_v34 = vsel %vm340_vm15, %v743_v33, %v382_v8  ;;  %440 = vst.msk [vmem:[%s818_s29 + $0xa0] sm:$0xff] %vm419_vm12, %v407_v21  ;;  %441 = vst.msk [vmem:[%s818_s29 + $0xa8] sm:$0xff] %vm419_vm12, %v408_v22  ;;  %v415_v37 = vsel %vm341_vm11, %v1031_v31, %v383_v11 }
  0x9f   : > { %442 = vst.msk [vmem:[%s818_s29 + $0xb0] sm:$0xff] %vm419_vm12, %v409_v23  ;;  %443 = vst.msk [vmem:[%s818_s29 + $0xb8] sm:$0xff] %vm419_vm12, %v410_v25  ;;  %v416_v9 = vsel %vm342_vm10, %v749_v35, %v384_v12  ;;  %v417_v33 = vsel %vm343_vm14, %v1032_v40, %v385_v13  ;;  %v418_v41 = vsel %vm344_vm13, %v755_v38, %v386_v29 }
  0xa0   : > { %444 = vst.msk [vmem:[%s818_s29 + $0xc0] sm:$0xff] %vm419_vm12, %v411_v27  ;;  %445 = vst.msk [vmem:[%s818_s29 + $0xc8] sm:$0xff] %vm419_vm12, %v412_v28 }
  0xa1   : > { %446 = vst.msk [vmem:[%s818_s29 + $0xd0] sm:$0xff] %vm419_vm12, %v413_v32  ;;  %447 = vst.msk [vmem:[%s818_s29 + $0xd8] sm:$0xff] %vm419_vm12, %v414_v34 }
  0xa2   : > { %448 = vst.msk [vmem:[%s818_s29 + $0xe0] sm:$0xff] %vm419_vm12, %v415_v37  ;;  %449 = vst.msk [vmem:[%s818_s29 + $0xe8] sm:$0xff] %vm419_vm12, %v416_v9 }
  0xa3   : > { %450 = vst.msk [vmem:[%s818_s29 + $0xf0] sm:$0xff] %vm419_vm12, %v417_v33  ;;  %451 = vst.msk [vmem:[%s818_s29 + $0xf8] sm:$0xff] %vm419_vm12, %v418_v41 }
  0xa4 PF: > { %s16_s17 = sadd.s32 1, %s538_s17  }
  0xa5   : > { %p13_p4 = scmp.ge.s32.totalorder %s16_s17, 4  }
  0xa7   :  { %15 = sbr.rel (!%p13_p4) target bundleno = 3 (0x3), region = 66 }

</bundles_post_ra>
